<compile_context>
chip_gen: v6e
topology: v6e:2x2x1
jax: 0.10.0
libtpu: 0.0.40
codegen_flags: <defaults>
</compile_context>

<pallas_src>
import functools

import jax
import jax.numpy as jnp
from jax import lax
from jax.experimental import pallas as pl
from jax.experimental.pallas import tpu as pltpu

_EPS = 1e-5  # nn.BatchNorm2d default eps


# ----------------------------------------------------------------------------
# Helper: pick the strided output pixels out of a dense (H*W, C) slab with a
# constant 0/1 selection matmul (MXU friendly; avoids strided slices / exotic
# reshapes inside the kernel).
# ----------------------------------------------------------------------------
def _stride_select(acc, H, W, Ho, Wo, stride):
    if stride == 1:
        return acc
    p = lax.broadcasted_iota(jnp.int32, (Ho * Wo, H * W), 0)
    q = lax.broadcasted_iota(jnp.int32, (Ho * Wo, H * W), 1)
    src = (stride * (p // Wo)) * W + stride * (p % Wo)
    sel = (q == src).astype(jnp.float32)
    return jnp.dot(sel, acc, preferred_element_type=jnp.float32)  # (Ho*Wo, C)


# ----------------------------------------------------------------------------
# Fused 3x3 conv (padding=1, stride=s) + optional fused "BN+ReLU of the
# previous layer" on the input + BatchNorm batch-statistic accumulation on the
# output (per-channel sum / sum-of-squares, accumulated across the batch grid
# axis while the accumulator is still in VMEM).
# ----------------------------------------------------------------------------
def _conv3x3_fused_kernel(x_ref, w_ref, b_ref, ps_ref, psh_ref,
                          out_ref, sum_ref, sq_ref,
                          *, H, W, Ho, Wo, stride, apply_pre):
    # x_ref: (1, H+2, W+2, Cin) zero-padded tile
    # w_ref: (3, 3, Cin, Cout); b_ref: (1, Cout)
    # ps_ref / psh_ref: (1, Cin) per-channel scale/shift of the *previous* BN
    @pl.when(pl.program_id(0) == 0)
    def _():
        sum_ref[...] = jnp.zeros_like(sum_ref)
        sq_ref[...] = jnp.zeros_like(sq_ref)

    Cout = out_ref.shape[-1]
    xp = x_ref[0].astype(jnp.float32)                      # (H+2, W+2, Cin)
    Cin = xp.shape[-1]

    if apply_pre:
        # Fused prologue: y = relu(bn_prev(x)).  PyTorch pads AFTER bn+relu,
        # so re-zero the 1-pixel halo with an iota mask.
        xp = jnp.maximum(xp * ps_ref[0] + psh_ref[0], 0.0)
        r = lax.broadcasted_iota(jnp.int32, (H + 2, W + 2, Cin), 0)
        c = lax.broadcasted_iota(jnp.int32, (H + 2, W + 2, Cin), 1)
        inside = (r >= 1) & (r <= H) & (c >= 1) & (c <= W)
        xp = jnp.where(inside, xp, 0.0)

    acc = jnp.zeros((H * W, Cout), jnp.float32)
    for dy in range(3):
        for dx in range(3):
            patch = xp[dy:dy + H, dx:dx + W, :].reshape(H * W, Cin)
            acc += jnp.dot(patch, w_ref[dy, dx],
                           preferred_element_type=jnp.float32)
    acc += b_ref[0][None, :]

    # strided output pixels only (no dense HBM writeback)
    acc = _stride_select(acc, H, W, Ho, Wo, stride)        # (Ho*Wo, Cout)

    # fused BatchNorm batch statistics on the conv output
    sum_ref[...] += jnp.sum(acc, axis=0, keepdims=True)
    sq_ref[...] += jnp.sum(acc * acc, axis=0, keepdims=True)

    out_ref[0] = acc.reshape(Ho, Wo, Cout).astype(out_ref.dtype)


def conv3x3_bn_stats(x, w, b, pre_scale, pre_shift, *, stride, apply_pre):
    N, H, W, Cin = x.shape
    Cout = w.shape[-1]
    Ho = (H - 1) // stride + 1
    Wo = (W - 1) // stride + 1
    xp = jnp.pad(x, ((0, 0), (1, 1), (1, 1), (0, 0)))
    kern = functools.partial(_conv3x3_fused_kernel, H=H, W=W, Ho=Ho, Wo=Wo,
                             stride=stride, apply_pre=apply_pre)
    out, sums, sqs = pl.pallas_call(
        kern,
        out_shape=(jax.ShapeDtypeStruct((N, Ho, Wo, Cout), x.dtype),
                   jax.ShapeDtypeStruct((1, Cout), jnp.float32),
                   jax.ShapeDtypeStruct((1, Cout), jnp.float32)),
        grid=(N,),
        in_specs=[
            pl.BlockSpec((1, H + 2, W + 2, Cin), lambda n: (n, 0, 0, 0)),
            pl.BlockSpec((3, 3, Cin, Cout), lambda n: (0, 0, 0, 0)),
            pl.BlockSpec((1, Cout), lambda n: (0, 0)),
            pl.BlockSpec((1, Cin), lambda n: (0, 0)),
            pl.BlockSpec((1, Cin), lambda n: (0, 0)),
        ],
        out_specs=(pl.BlockSpec((1, Ho, Wo, Cout), lambda n: (n, 0, 0, 0)),
                   pl.BlockSpec((1, Cout), lambda n: (0, 0)),
                   pl.BlockSpec((1, Cout), lambda n: (0, 0))),
        # stat outputs accumulate across the batch axis -> "arbitrary"
        compiler_params=pltpu.CompilerParams(dimension_semantics=("arbitrary",)),
    )(xp, w, b.reshape(1, Cout),
      pre_scale.reshape(1, Cin), pre_shift.reshape(1, Cin))
    return out, sums, sqs


# ----------------------------------------------------------------------------
# Final fused epilogue: relu(bn2(c2) + shortcut)
#   identity variant: shortcut = x
#   projection variant: shortcut = strided 1x1 conv of x (computed in VMEM)
# ----------------------------------------------------------------------------
def _bn_add_relu_identity_kernel(c2_ref, x_ref, sc_ref, sh_ref, out_ref):
    y = c2_ref[0].astype(jnp.float32) * sc_ref[0] + sh_ref[0]
    y = y + x_ref[0].astype(jnp.float32)
    out_ref[0] = jnp.maximum(y, 0.0).astype(out_ref.dtype)


def bn_add_relu_identity(c2, x, scale, shift):
    N, H, W, C = c2.shape
    return pl.pallas_call(
        _bn_add_relu_identity_kernel,
        out_shape=jax.ShapeDtypeStruct((N, H, W, C), c2.dtype),
        grid=(N,),
        in_specs=[
            pl.BlockSpec((1, H, W, C), lambda n: (n, 0, 0, 0)),
            pl.BlockSpec((1, H, W, C), lambda n: (n, 0, 0, 0)),
            pl.BlockSpec((1, C), lambda n: (0, 0)),
            pl.BlockSpec((1, C), lambda n: (0, 0)),
        ],
        out_specs=pl.BlockSpec((1, H, W, C), lambda n: (n, 0, 0, 0)),
        compiler_params=pltpu.CompilerParams(dimension_semantics=("parallel",)),
    )(c2, x, scale.reshape(1, C), shift.reshape(1, C))


def _bn_add_relu_proj_kernel(c2_ref, x_ref, sc_ref, sh_ref, w3_ref, b3_ref,
                             out_ref, *, H, W, Ho, Wo, stride):
    Cin = x_ref.shape[-1]
    Cout = out_ref.shape[-1]
    y = c2_ref[0].astype(jnp.float32) * sc_ref[0] + sh_ref[0]       # (Ho,Wo,Cout)
    xf = x_ref[0].astype(jnp.float32).reshape(H * W, Cin)
    shortcut = jnp.dot(xf, w3_ref[...], preferred_element_type=jnp.float32)
    shortcut = shortcut + b3_ref[0][None, :]
    shortcut = _stride_select(shortcut, H, W, Ho, Wo, stride)        # (Ho*Wo,Cout)
    y = y + shortcut.reshape(Ho, Wo, Cout)
    out_ref[0] = jnp.maximum(y, 0.0).astype(out_ref.dtype)


def bn_add_relu_proj(c2, x, scale, shift, w3, b3, *, stride):
    N, Ho, Wo, Cout = c2.shape
    _, H, W, Cin = x.shape
    kern = functools.partial(_bn_add_relu_proj_kernel, H=H, W=W, Ho=Ho, Wo=Wo,
                             stride=stride)
    return pl.pallas_call(
        kern,
        out_shape=jax.ShapeDtypeStruct((N, Ho, Wo, Cout), c2.dtype),
        grid=(N,),
        in_specs=[
            pl.BlockSpec((1, Ho, Wo, Cout), lambda n: (n, 0, 0, 0)),
            pl.BlockSpec((1, H, W, Cin), lambda n: (n, 0, 0, 0)),
            pl.BlockSpec((1, Cout), lambda n: (0, 0)),
            pl.BlockSpec((1, Cout), lambda n: (0, 0)),
            pl.BlockSpec((Cin, Cout), lambda n: (0, 0)),
            pl.BlockSpec((1, Cout), lambda n: (0, 0)),
        ],
        out_specs=pl.BlockSpec((1, Ho, Wo, Cout), lambda n: (n, 0, 0, 0)),
        compiler_params=pltpu.CompilerParams(dimension_semantics=("parallel",)),
    )(c2, x, scale.reshape(1, Cout), shift.reshape(1, Cout),
      w3, b3.reshape(1, Cout))


# ----------------------------------------------------------------------------
# Residual block
# ----------------------------------------------------------------------------
class ResidualPallas:
    """Pallas port of d2l `Residual` (training-mode BN, deterministic init)."""

    def __init__(self, input_channels, num_channels, use_1x1conv=False,
                 strides=1, key=None):
        if key is None:
            key = jax.random.PRNGKey(0)
        k1, k2, k3 = jax.random.split(key, 3)
        scale = 0.1
        self.num_channels = num_channels
        # conv weights stored HWIO for the NHWC kernels
        self.w1 = scale * jax.random.normal(
            k1, (3, 3, input_channels, num_channels), jnp.float32)
        self.b1 = jnp.zeros((num_channels,), jnp.float32)
        self.w2 = scale * jax.random.normal(
            k2, (3, 3, num_channels, num_channels), jnp.float32)
        self.b2 = jnp.zeros((num_channels,), jnp.float32)
        self.use_1x1conv = use_1x1conv
        self.strides = strides
        if use_1x1conv:
            self.w3 = scale * jax.random.normal(
                k3, (input_channels, num_channels), jnp.float32)
            self.b3 = jnp.zeros((num_channels,), jnp.float32)
        # BatchNorm affine params (PyTorch default init: weight=1, bias=0)
        self.g1 = jnp.ones((num_channels,), jnp.float32)
        self.be1 = jnp.zeros((num_channels,), jnp.float32)
        self.g2 = jnp.ones((num_channels,), jnp.float32)
        self.be2 = jnp.zeros((num_channels,), jnp.float32)
        # TODO(synk): BN running_mean/var momentum bookkeeping is not replicated
        # (it does not affect the training-mode forward output).

    @staticmethod
    def _affine(sums, sqs, count, gamma, beta):
        mean = sums[0] / count
        # biased variance — what PyTorch BN uses for training-mode normalization
        var = jnp.maximum(sqs[0] / count - mean * mean, 0.0)
        scale = gamma * lax.rsqrt(var + _EPS)
        shift = beta - mean * scale
        return scale, shift

    def __call__(self, x_nchw):
        s = self.strides
        x = jnp.transpose(x_nchw, (0, 2, 3, 1)).astype(jnp.float32)  # NCHW->NHWC
        N, H, W, Cin = x.shape
        if not self.use_1x1conv:
            assert s == 1 and Cin == self.num_channels, \
                "identity shortcut requires stride=1 and Cin == Cout"

        # conv1 (strided) + fused BN1 batch-stat accumulation
        ones_c = jnp.ones((Cin,), jnp.float32)
        zeros_c = jnp.zeros((Cin,), jnp.float32)
        c1, s1, q1 = conv3x3_bn_stats(x, self.w1, self.b1, ones_c, zeros_c,
                                      stride=s, apply_pre=False)
        _, Ho, Wo, _ = c1.shape
        cnt = float(N * Ho * Wo)
        scale1, shift1 = self._affine(s1, q1, cnt, self.g1, self.be1)

        # conv2 with BN1-normalise+ReLU fused into its prologue,
        # + fused BN2 batch-stat accumulation
        c2, s2, q2 = conv3x3_bn_stats(c1, self.w2, self.b2, scale1, shift1,
                                      stride=1, apply_pre=True)
        scale2, shift2 = self._affine(s2, q2, cnt, self.g2, self.be2)

        # fused epilogue: relu(bn2(c2) + shortcut)
        if self.use_1x1conv:
            out = bn_add_relu_proj(c2, x, scale2, shift2, self.w3, self.b3,
                                   stride=s)
        else:
            out = bn_add_relu_identity(c2, x, scale2, shift2)
        return jnp.transpose(out, (0, 3, 1, 2))              # NHWC -> NCHW


# ----------------------------------------------------------------------------
# Pure-JAX reference (for correctness check)
# ----------------------------------------------------------------------------
def _residual_ref(blk, x_nchw):
    x = jnp.transpose(x_nchw, (0, 2, 3, 1))
    s = blk.strides
    dn = ('NHWC', 'HWIO', 'NHWC')

    def conv(x, w, b, stride, pad):
        y = lax.conv_general_dilated(x, w, (stride, stride),
                                     [(pad, pad), (pad, pad)],
                                     dimension_numbers=dn)
        return y + b

    def bn(x, g, b):
        m = jnp.mean(x, axis=(0, 1, 2))
        v = jnp.var(x, axis=(0, 1, 2))
        return (x - m) * lax.rsqrt(v + _EPS) * g + b

    y = jax.nn.relu(bn(conv(x, blk.w1, blk.b1, s, 1), blk.g1, blk.be1))
    y = bn(conv(y, blk.w2, blk.b2, 1, 1), blk.g2, blk.be2)
    if blk.use_1x1conv:
        x = conv(x, blk.w3.reshape(1, 1, *blk.w3.shape), blk.b3, s, 0)
    return jnp.transpose(jax.nn.relu(y + x), (0, 3, 1, 2))


if __name__ == "__main__":
    key = jax.random.PRNGKey(0)
    kx, kp1, kp2 = jax.random.split(key, 3)
    x = jax.random.normal(kx, (2, 4, 16, 16), jnp.float32)  # NCHW, PyTorch layout

    # Config 1: identity shortcut (module defaults: use_1x1conv=False, strides=1)
    blk1 = ResidualPallas(4, 4, use_1x1conv=False, strides=1, key=kp1)
    out1 = jax.block_until_ready(blk1(x))
    assert out1.shape == (2, 4, 16, 16)
    assert jnp.allclose(out1, _residual_ref(blk1, x), rtol=1e-3, atol=1e-3)

    # Config 2: 1x1-conv shortcut, stride 2, channel change 4 -> 8
    blk2 = ResidualPallas(4, 8, use_1x1conv=True, strides=2, key=kp2)
    out2 = jax.block_until_ready(blk2(x))
    assert out2.shape == (2, 8, 8, 8)
    assert jnp.allclose(out2, _residual_ref(blk2, x), rtol=1e-3, atol=1e-3)

    print("KERNEL_OK")
</pallas_src>

<mosaic_0001>
module attributes {stable_mosaic.version = 11 : i64} {
  func.func @_conv3x3_fused_kernel(%arg0: i32, %arg1: memref<1x18x18x4xf32, #tpu.memory_space<vmem>>, %arg2: memref<3x3x4x4xf32, #tpu.memory_space<vmem>>, %arg3: memref<1x4xf32, #tpu.memory_space<vmem>>, %arg4: memref<1x4xf32, #tpu.memory_space<vmem>>, %arg5: memref<1x4xf32, #tpu.memory_space<vmem>>, %arg6: memref<1x16x16x4xf32, #tpu.memory_space<vmem>>, %arg7: memref<1x4xf32, #tpu.memory_space<vmem>>, %arg8: memref<1x4xf32, #tpu.memory_space<vmem>>) attributes {dimension_semantics = [#tpu.dimension_semantics<arbitrary>], iteration_bounds = array<i64: 2>, scalar_prefetch = 0 : i64, scratch_operands = 0 : i64, tpu.core_type = #tpu.core_type<tc>, window_params = [{transform_indices = @transform_0, window_bounds = array<i64: 1, 18, 18, 4>}, {pipeline_mode = #tpu.pipeline_mode<synchronous>, transform_indices = @transform_1, window_bounds = array<i64: 3, 3, 4, 4>}, {pipeline_mode = #tpu.pipeline_mode<synchronous>, transform_indices = @transform_2, window_bounds = array<i64: 1, 4>}, {pipeline_mode = #tpu.pipeline_mode<synchronous>, transform_indices = @transform_3, window_bounds = array<i64: 1, 4>}, {pipeline_mode = #tpu.pipeline_mode<synchronous>, transform_indices = @transform_4, window_bounds = array<i64: 1, 4>}, {transform_indices = @transform_5, window_bounds = array<i64: 1, 16, 16, 4>}, {pipeline_mode = #tpu.pipeline_mode<synchronous>, transform_indices = @transform_6, window_bounds = array<i64: 1, 4>}, {pipeline_mode = #tpu.pipeline_mode<synchronous>, transform_indices = @transform_7, window_bounds = array<i64: 1, 4>}]} {
    %c0_i32 = arith.constant 0 : i32
    %0 = arith.cmpi eq, %arg0, %c0_i32 : i32
    %1 = arith.extui %0 : i1 to i32
    %c0_i32_0 = arith.constant 0 : i32
    %2 = arith.cmpi ne, %1, %c0_i32_0 : i32
    scf.if %2 {
      %cst_63 = arith.constant 0.000000e+00 : f32
      %80 = vector.broadcast %cst_63 : f32 to vector<1x4xf32>
      %c0_64 = arith.constant 0 : index
      %c0_65 = arith.constant 0 : index
      %81 = vector.load %arg7[%c0_64, %c0_65] : memref<1x4xf32, #tpu.memory_space<vmem>>, vector<1x4xf32>
      tpu.vector_store %arg7[%c0_64, %c0_65], %80 {strides = array<i32>} : memref<1x4xf32, #tpu.memory_space<vmem>>, vector<1x4xf32>,
      %cst_66 = arith.constant 0.000000e+00 : f32
      %82 = vector.broadcast %cst_66 : f32 to vector<1x4xf32>
      %c0_67 = arith.constant 0 : index
      %c0_68 = arith.constant 0 : index
      %83 = vector.load %arg8[%c0_67, %c0_68] : memref<1x4xf32, #tpu.memory_space<vmem>>, vector<1x4xf32>
      tpu.vector_store %arg8[%c0_67, %c0_68], %82 {strides = array<i32>} : memref<1x4xf32, #tpu.memory_space<vmem>>, vector<1x4xf32>,
    } else {
    }
    %c0 = arith.constant 0 : index
    %c0_1 = arith.constant 0 : index
    %c0_2 = arith.constant 0 : index
    %c0_3 = arith.constant 0 : index
    %3 = vector.load %arg1[%c0, %c0_1, %c0_2, %c0_3] : memref<1x18x18x4xf32, #tpu.memory_space<vmem>>, vector<1x18x18x4xf32>
    %4 = vector.shape_cast %3 : vector<1x18x18x4xf32> to vector<18x18x4xf32>
    %cst = arith.constant 0.000000e+00 : f32
    %5 = vector.broadcast %cst : f32 to vector<256x4xf32>
    %6 = vector.extract_strided_slice %4 {offsets = [0, 0, 0], sizes = [16, 16, 4], strides = [1, 1, 1]} : vector<18x18x4xf32> to vector<16x16x4xf32>
    %7 = vector.shape_cast %6 : vector<16x16x4xf32> to vector<256x4xf32>
    %c0_4 = arith.constant 0 : index
    %c0_5 = arith.constant 0 : index
    %c0_6 = arith.constant 0 : index
    %c0_7 = arith.constant 0 : index
    %8 = vector.load %arg2[%c0_4, %c0_5, %c0_6, %c0_7] : memref<3x3x4x4xf32, #tpu.memory_space<vmem>>, vector<1x1x4x4xf32>
    %9 = vector.shape_cast %8 : vector<1x1x4x4xf32> to vector<4x4xf32>
    %cst_8 = arith.constant dense<0.000000e+00> : vector<256x4xf32>
    %10 = tpu.matmul %7, %9, %cst_8 {dimension_numbers = #tpu.dot_dimension_numbers<[1], [0], [0], [1], [0, 0, 1, 1], [], []>} : vector<256x4xf32>, vector<4x4xf32>, vector<256x4xf32> -> vector<256x4xf32>
    %11 = arith.addf %5, %10 : vector<256x4xf32>
    %12 = vector.extract_strided_slice %4 {offsets = [0, 1, 0], sizes = [16, 16, 4], strides = [1, 1, 1]} : vector<18x18x4xf32> to vector<16x16x4xf32>
    %13 = vector.shape_cast %12 : vector<16x16x4xf32> to vector<256x4xf32>
    %c0_9 = arith.constant 0 : index
    %c1 = arith.constant 1 : index
    %c0_10 = arith.constant 0 : index
    %c0_11 = arith.constant 0 : index
    %14 = vector.load %arg2[%c0_9, %c1, %c0_10, %c0_11] : memref<3x3x4x4xf32, #tpu.memory_space<vmem>>, vector<1x1x4x4xf32>
    %15 = vector.shape_cast %14 : vector<1x1x4x4xf32> to vector<4x4xf32>
    %cst_12 = arith.constant dense<0.000000e+00> : vector<256x4xf32>
    %16 = tpu.matmul %13, %15, %cst_12 {dimension_numbers = #tpu.dot_dimension_numbers<[1], [0], [0], [1], [0, 0, 1, 1], [], []>} : vector<256x4xf32>, vector<4x4xf32>, vector<256x4xf32> -> vector<256x4xf32>
    %17 = arith.addf %11, %16 : vector<256x4xf32>
    %18 = vector.extract_strided_slice %4 {offsets = [0, 2, 0], sizes = [16, 16, 4], strides = [1, 1, 1]} : vector<18x18x4xf32> to vector<16x16x4xf32>
    %19 = vector.shape_cast %18 : vector<16x16x4xf32> to vector<256x4xf32>
    %c0_13 = arith.constant 0 : index
    %c2 = arith.constant 2 : index
    %c0_14 = arith.constant 0 : index
    %c0_15 = arith.constant 0 : index
    %20 = vector.load %arg2[%c0_13, %c2, %c0_14, %c0_15] : memref<3x3x4x4xf32, #tpu.memory_space<vmem>>, vector<1x1x4x4xf32>
    %21 = vector.shape_cast %20 : vector<1x1x4x4xf32> to vector<4x4xf32>
    %cst_16 = arith.constant dense<0.000000e+00> : vector<256x4xf32>
    %22 = tpu.matmul %19, %21, %cst_16 {dimension_numbers = #tpu.dot_dimension_numbers<[1], [0], [0], [1], [0, 0, 1, 1], [], []>} : vector<256x4xf32>, vector<4x4xf32>, vector<256x4xf32> -> vector<256x4xf32>
    %23 = arith.addf %17, %22 : vector<256x4xf32>
    %24 = vector.extract_strided_slice %4 {offsets = [1, 0, 0], sizes = [16, 16, 4], strides = [1, 1, 1]} : vector<18x18x4xf32> to vector<16x16x4xf32>
    %25 = vector.shape_cast %24 : vector<16x16x4xf32> to vector<256x4xf32>
    %c1_17 = arith.constant 1 : index
    %c0_18 = arith.constant 0 : index
    %c0_19 = arith.constant 0 : index
    %c0_20 = arith.constant 0 : index
    %26 = vector.load %arg2[%c1_17, %c0_18, %c0_19, %c0_20] : memref<3x3x4x4xf32, #tpu.memory_space<vmem>>, vector<1x1x4x4xf32>
    %27 = vector.shape_cast %26 : vector<1x1x4x4xf32> to vector<4x4xf32>
    %cst_21 = arith.constant dense<0.000000e+00> : vector<256x4xf32>
    %28 = tpu.matmul %25, %27, %cst_21 {dimension_numbers = #tpu.dot_dimension_numbers<[1], [0], [0], [1], [0, 0, 1, 1], [], []>} : vector<256x4xf32>, vector<4x4xf32>, vector<256x4xf32> -> vector<256x4xf32>
    %29 = arith.addf %23, %28 : vector<256x4xf32>
    %30 = vector.extract_strided_slice %4 {offsets = [1, 1, 0], sizes = [16, 16, 4], strides = [1, 1, 1]} : vector<18x18x4xf32> to vector<16x16x4xf32>
    %31 = vector.shape_cast %30 : vector<16x16x4xf32> to vector<256x4xf32>
    %c1_22 = arith.constant 1 : index
    %c1_23 = arith.constant 1 : index
    %c0_24 = arith.constant 0 : index
    %c0_25 = arith.constant 0 : index
    %32 = vector.load %arg2[%c1_22, %c1_23, %c0_24, %c0_25] : memref<3x3x4x4xf32, #tpu.memory_space<vmem>>, vector<1x1x4x4xf32>
    %33 = vector.shape_cast %32 : vector<1x1x4x4xf32> to vector<4x4xf32>
    %cst_26 = arith.constant dense<0.000000e+00> : vector<256x4xf32>
    %34 = tpu.matmul %31, %33, %cst_26 {dimension_numbers = #tpu.dot_dimension_numbers<[1], [0], [0], [1], [0, 0, 1, 1], [], []>} : vector<256x4xf32>, vector<4x4xf32>, vector<256x4xf32> -> vector<256x4xf32>
    %35 = arith.addf %29, %34 : vector<256x4xf32>
    %36 = vector.extract_strided_slice %4 {offsets = [1, 2, 0], sizes = [16, 16, 4], strides = [1, 1, 1]} : vector<18x18x4xf32> to vector<16x16x4xf32>
    %37 = vector.shape_cast %36 : vector<16x16x4xf32> to vector<256x4xf32>
    %c1_27 = arith.constant 1 : index
    %c2_28 = arith.constant 2 : index
    %c0_29 = arith.constant 0 : index
    %c0_30 = arith.constant 0 : index
    %38 = vector.load %arg2[%c1_27, %c2_28, %c0_29, %c0_30] : memref<3x3x4x4xf32, #tpu.memory_space<vmem>>, vector<1x1x4x4xf32>
    %39 = vector.shape_cast %38 : vector<1x1x4x4xf32> to vector<4x4xf32>
    %cst_31 = arith.constant dense<0.000000e+00> : vector<256x4xf32>
    %40 = tpu.matmul %37, %39, %cst_31 {dimension_numbers = #tpu.dot_dimension_numbers<[1], [0], [0], [1], [0, 0, 1, 1], [], []>} : vector<256x4xf32>, vector<4x4xf32>, vector<256x4xf32> -> vector<256x4xf32>
    %41 = arith.addf %35, %40 : vector<256x4xf32>
    %42 = vector.extract_strided_slice %4 {offsets = [2, 0, 0], sizes = [16, 16, 4], strides = [1, 1, 1]} : vector<18x18x4xf32> to vector<16x16x4xf32>
    %43 = vector.shape_cast %42 : vector<16x16x4xf32> to vector<256x4xf32>
    %c2_32 = arith.constant 2 : index
    %c0_33 = arith.constant 0 : index
    %c0_34 = arith.constant 0 : index
    %c0_35 = arith.constant 0 : index
    %44 = vector.load %arg2[%c2_32, %c0_33, %c0_34, %c0_35] : memref<3x3x4x4xf32, #tpu.memory_space<vmem>>, vector<1x1x4x4xf32>
    %45 = vector.shape_cast %44 : vector<1x1x4x4xf32> to vector<4x4xf32>
    %cst_36 = arith.constant dense<0.000000e+00> : vector<256x4xf32>
    %46 = tpu.matmul %43, %45, %cst_36 {dimension_numbers = #tpu.dot_dimension_numbers<[1], [0], [0], [1], [0, 0, 1, 1], [], []>} : vector<256x4xf32>, vector<4x4xf32>, vector<256x4xf32> -> vector<256x4xf32>
    %47 = arith.addf %41, %46 : vector<256x4xf32>
    %48 = vector.extract_strided_slice %4 {offsets = [2, 1, 0], sizes = [16, 16, 4], strides = [1, 1, 1]} : vector<18x18x4xf32> to vector<16x16x4xf32>
    %49 = vector.shape_cast %48 : vector<16x16x4xf32> to vector<256x4xf32>
    %c2_37 = arith.constant 2 : index
    %c1_38 = arith.constant 1 : index
    %c0_39 = arith.constant 0 : index
    %c0_40 = arith.constant 0 : index
    %50 = vector.load %arg2[%c2_37, %c1_38, %c0_39, %c0_40] : memref<3x3x4x4xf32, #tpu.memory_space<vmem>>, vector<1x1x4x4xf32>
    %51 = vector.shape_cast %50 : vector<1x1x4x4xf32> to vector<4x4xf32>
    %cst_41 = arith.constant dense<0.000000e+00> : vector<256x4xf32>
    %52 = tpu.matmul %49, %51, %cst_41 {dimension_numbers = #tpu.dot_dimension_numbers<[1], [0], [0], [1], [0, 0, 1, 1], [], []>} : vector<256x4xf32>, vector<4x4xf32>, vector<256x4xf32> -> vector<256x4xf32>
    %53 = arith.addf %47, %52 : vector<256x4xf32>
    %54 = vector.extract_strided_slice %4 {offsets = [2, 2, 0], sizes = [16, 16, 4], strides = [1, 1, 1]} : vector<18x18x4xf32> to vector<16x16x4xf32>
    %55 = vector.shape_cast %54 : vector<16x16x4xf32> to vector<256x4xf32>
    %c2_42 = arith.constant 2 : index
    %c2_43 = arith.constant 2 : index
    %c0_44 = arith.constant 0 : index
    %c0_45 = arith.constant 0 : index
    %56 = vector.load %arg2[%c2_42, %c2_43, %c0_44, %c0_45] : memref<3x3x4x4xf32, #tpu.memory_space<vmem>>, vector<1x1x4x4xf32>
    %57 = vector.shape_cast %56 : vector<1x1x4x4xf32> to vector<4x4xf32>
    %cst_46 = arith.constant dense<0.000000e+00> : vector<256x4xf32>
    %58 = tpu.matmul %55, %57, %cst_46 {dimension_numbers = #tpu.dot_dimension_numbers<[1], [0], [0], [1], [0, 0, 1, 1], [], []>} : vector<256x4xf32>, vector<4x4xf32>, vector<256x4xf32> -> vector<256x4xf32>
    %59 = arith.addf %53, %58 : vector<256x4xf32>
    %c0_47 = arith.constant 0 : index
    %c0_48 = arith.constant 0 : index
    %60 = vector.load %arg3[%c0_47, %c0_48] : memref<1x4xf32, #tpu.memory_space<vmem>>, vector<1x4xf32>
    %61 = vector.shape_cast %60 : vector<1x4xf32> to vector<4xf32>
    %62 = vector.shape_cast %61 : vector<4xf32> to vector<1x4xf32>
    %63 = vector.broadcast %62 : vector<1x4xf32> to vector<256x4xf32>
    %64 = arith.addf %59, %63 : vector<256x4xf32>
    %c0_49 = arith.constant 0 : index
    %c0_50 = arith.constant 0 : index
    %65 = vector.load %arg7[%c0_49, %c0_50] : memref<1x4xf32, #tpu.memory_space<vmem>>, vector<1x4xf32>
    %cst_51 = arith.constant dense<0.000000e+00> : vector<4xf32>
    %66 = vector.multi_reduction <add>, %64, %cst_51 [0] : vector<256x4xf32> to vector<4xf32>
    %67 = vector.shape_cast %66 : vector<4xf32> to vector<1x4xf32>
    %68 = arith.addf %65, %67 : vector<1x4xf32>
    %c0_52 = arith.constant 0 : index
    %c0_53 = arith.constant 0 : index
    %69 = vector.load %arg7[%c0_52, %c0_53] : memref<1x4xf32, #tpu.memory_space<vmem>>, vector<1x4xf32>
    tpu.vector_store %arg7[%c0_52, %c0_53], %68 {strides = array<i32>} : memref<1x4xf32, #tpu.memory_space<vmem>>, vector<1x4xf32>,
    %c0_54 = arith.constant 0 : index
    %c0_55 = arith.constant 0 : index
    %70 = vector.load %arg8[%c0_54, %c0_55] : memref<1x4xf32, #tpu.memory_space<vmem>>, vector<1x4xf32>
    %71 = arith.mulf %64, %64 : vector<256x4xf32>
    %cst_56 = arith.constant dense<0.000000e+00> : vector<4xf32>
    %72 = vector.multi_reduction <add>, %71, %cst_56 [0] : vector<256x4xf32> to vector<4xf32>
    %73 = vector.shape_cast %72 : vector<4xf32> to vector<1x4xf32>
    %74 = arith.addf %70, %73 : vector<1x4xf32>
    %c0_57 = arith.constant 0 : index
    %c0_58 = arith.constant 0 : index
    %75 = vector.load %arg8[%c0_57, %c0_58] : memref<1x4xf32, #tpu.memory_space<vmem>>, vector<1x4xf32>
    tpu.vector_store %arg8[%c0_57, %c0_58], %74 {strides = array<i32>} : memref<1x4xf32, #tpu.memory_space<vmem>>, vector<1x4xf32>,
    %76 = vector.shape_cast %64 : vector<256x4xf32> to vector<16x16x4xf32>
    %c0_59 = arith.constant 0 : index
    %c0_60 = arith.constant 0 : index
    %c0_61 = arith.constant 0 : index
    %c0_62 = arith.constant 0 : index
    %77 = vector.load %arg6[%c0_59, %c0_60, %c0_61, %c0_62] : memref<1x16x16x4xf32, #tpu.memory_space<vmem>>, vector<1x16x16x4xf32>
    %78 = vector.shape_cast %77 : vector<1x16x16x4xf32> to vector<16x16x4xf32>
    %79 = vector.shape_cast %76 : vector<16x16x4xf32> to vector<1x16x16x4xf32>
    tpu.vector_store %arg6[%c0_59, %c0_60, %c0_61, %c0_62], %79 {strides = array<i32>} : memref<1x16x16x4xf32, #tpu.memory_space<vmem>>, vector<1x16x16x4xf32>,
    return
  }
  func.func @transform_0(%arg0: i32) -> (i32, i32, i32, i32) {
    %c0_i32 = arith.constant 0 : i32
    %c0_i32_0 = arith.constant 0 : i32
    %c0_i32_1 = arith.constant 0 : i32
    %c0_i32_2 = arith.constant 0 : i32
    return %arg0, %c0_i32, %c0_i32_0, %c0_i32_1 : i32, i32, i32, i32
  }
  func.func @transform_1(%arg0: i32) -> (i32, i32, i32, i32) {
    %c0_i32 = arith.constant 0 : i32
    %c0_i32_0 = arith.constant 0 : i32
    %c0_i32_1 = arith.constant 0 : i32
    %c0_i32_2 = arith.constant 0 : i32
    %c0_i32_3 = arith.constant 0 : i32
    return %c0_i32, %c0_i32_0, %c0_i32_1, %c0_i32_2 : i32, i32, i32, i32
  }
  func.func @transform_2(%arg0: i32) -> (i32, i32) {
    %c0_i32 = arith.constant 0 : i32
    %c0_i32_0 = arith.constant 0 : i32
    %c0_i32_1 = arith.constant 0 : i32
    return %c0_i32, %c0_i32_0 : i32, i32
  }
  func.func @transform_3(%arg0: i32) -> (i32, i32) {
    %c0_i32 = arith.constant 0 : i32
    %c0_i32_0 = arith.constant 0 : i32
    %c0_i32_1 = arith.constant 0 : i32
    return %c0_i32, %c0_i32_0 : i32, i32
  }
  func.func @transform_4(%arg0: i32) -> (i32, i32) {
    %c0_i32 = arith.constant 0 : i32
    %c0_i32_0 = arith.constant 0 : i32
    %c0_i32_1 = arith.constant 0 : i32
    return %c0_i32, %c0_i32_0 : i32, i32
  }
  func.func @transform_5(%arg0: i32) -> (i32, i32, i32, i32) {
    %c0_i32 = arith.constant 0 : i32
    %c0_i32_0 = arith.constant 0 : i32
    %c0_i32_1 = arith.constant 0 : i32
    %c0_i32_2 = arith.constant 0 : i32
    return %arg0, %c0_i32, %c0_i32_0, %c0_i32_1 : i32, i32, i32, i32
  }
  func.func @transform_6(%arg0: i32) -> (i32, i32) {
    %c0_i32 = arith.constant 0 : i32
    %c0_i32_0 = arith.constant 0 : i32
    %c0_i32_1 = arith.constant 0 : i32
    return %c0_i32, %c0_i32_0 : i32, i32
  }
  func.func @transform_7(%arg0: i32) -> (i32, i32) {
    %c0_i32 = arith.constant 0 : i32
    %c0_i32_0 = arith.constant 0 : i32
    %c0_i32_1 = arith.constant 0 : i32
    return %c0_i32, %c0_i32_0 : i32, i32
  }
}

</mosaic_0001>

<bundles_post_ra>
// kernel: tpu_custom_call.1
= control target key start
LH: loop header
LB: loop body
LE: loop exit
PB: predicated region body
PF: predicated region fallthrough
CT: control target
= control target key end

     0   :  { %13 = vsyncpa [#allocation3], 0  ;;  %s6438_s0 = inlined_call_operand.vmem [shape: f32[2,18,18,4], index: 0, kind: input, shape index: {}]   ;;  %s6439_s1 = inlined_call_operand.vmem [shape: f32[3,3,4,4], index: 1, kind: input, shape index: {}]   ;;  %s6440_s2 = inlined_call_operand.vmem [shape: f32[1,4], index: 2, kind: input, shape index: {}]   ;;  %s6441_s3 = inlined_call_operand.vmem [shape: f32[1,4], index: 3, kind: input, shape index: {}]   ;;  %s6442_s4 = inlined_call_operand.vmem [shape: f32[1,4], index: 4, kind: input, shape index: {}]   ;;  %s6443_s5 = inlined_call_operand.vmem [shape: f32[2,16,16,4], index: 5, kind: output, shape index: {0}]   ;;  %s6444_s6 = inlined_call_operand.hbm [shape: f32[1,4], index: 6, kind: output, shape index: {1}]   ;;  %s6445_s7 = inlined_call_operand.hbm [shape: f32[1,4], index: 7, kind: output, shape index: {2}]  }
   0x1   :  { %14 = vsyncpa [#allocation5], 0  ;;  %s4635_s24 = smov 0  }
   0x2 LB: > { %s4641_s3 = sadd.s32 4294967295, %s4590_s24   ;;  %p3437_p0 = scmp.ge.s32.totalorder %s4590_s24, 1  ;;  %s4590_s24 = sphi %s4635_s24, %s20_s24  }
   0x3   : > { %p234_p1 = scmp.lt.s32.totalorder %s4590_s24, 3 }
   0x5   : > { %p235_p2 = pnand %p3437_p0, %p234_p1 }
   0x7   : > { %238 = sbr.rel (%p235_p2) target bundleno = 551 (0x227), region = 40 }
   0xc   : > { %p266_p3 = scmp.lt.s32.totalorder %s4641_s3, 1  ;;  %p3441_p4 = scmp.ne.s32.totalorder %s4641_s3, 0 }
   0xe   : > { %s267_s4 = scalar_select %p266_p3, %s4641_s3, 1 }
   0xf   : > { %279 = sbr.rel (%p3441_p4) target bundleno = 22 (0x16), region = 44 }
  0x10   : > { %s4504_s25 = smul.u32 432, %s267_s4  ;;  %s3754_s26 = sshll.u32 %s267_s4, 8 }
  0x11   : > { %s4650_s29 = scalar_lea.vmem %s6443_s5, %s3754_s26 }
  0x12   : > { %s4655_s9 = scalar_lea.vmem %s6438_s0, %s4504_s25 }
  0x14   : > { %vm280_vm0 = vcmask 24576   ;;  %v4592_v0 = vmov 0.0  }
  0x15   : > { %281 = vst.msk [vmem:[#allocation2] sm:$0x1] %vm280_vm0, %v4592_v0  ;;  %282 = vst.msk [vmem:[#allocation4] sm:$0x1] %vm280_vm0, %v4592_v0 }
  0x16 PF: > { %v3442_v1 = vld [vmem:[%s6439_s1 + $0x4] sm:$0xf]  ;;  %vm534_vm1 = vcmask 1043456   ;;  %v4665_v3 = vld [vmem:[%s4655_s9 + $0x8] sm:$0xff]  ;;  %vm386_vm2 = vcmask 1046528   ;;  %vm469_vm3 = vcmask 31744  }
  0x17   : > { %v4662_v2 = vld [vmem:[%s4655_s9] sm:$0xff]  ;;  %4502 = vmatprep.subr.msk.mxu1 %vm534_vm1, %v3442_v1  ;;  %4052 = vmatprep.subr.msk.mxu0 %vm534_vm1, %v3442_v1  ;;  %v388_v5 = vrot.slane %v4665_v3, 1  ;;  %v4675_v7 = vld [vmem:[%s4655_s9 + $0xc8] sm:$0xff]  ;;  %v4678_v8 = vld [vmem:[%s4655_s9 + $0x18] sm:$0xff]  ;;  %vm1055_vm4 = vcmask 1045504   ;;  %vm3194_vm5 = vcmask 24576  }
  0x18   : > { %v387_v4 = vrot.slane %v4662_v2, 1  ;;  %v4672_v6 = vld [vmem:[%s4655_s9 + $0xc0] sm:$0xff]  ;;  %4503 = vmatpush3.msk.msra.mxu1 %vm534_vm1, %v3442_v1  ;;  %4053 = vmatpush3.msk.msra.mxu0 %vm534_vm1, %v3442_v1  ;;  %v428_v10 = vrot.slane %v4675_v7, 1  ;;  %v4688_v12 = vld [vmem:[%s4655_s9 + $0x10] sm:$0x3]  ;;  %v392_v20 = vrot.slane %v4678_v8, 1 }
  0x19   : > { %v427_v9 = vrot.slane %v4672_v6, 1  ;;  %v337_v11 = vld [vmem:[%s6439_s1] sm:$0xf]  ;;  %v390_v14 = vrot.slane %v4688_v12, 1  ;;  %v4694_v15 = vld [vmem:[%s4655_s9 + $0xd0] sm:$0x3] }
  0x1a   : > { %v389_v13 = vsel %vm386_vm2, %v387_v4, %v388_v5  ;;  %4102 = vmatprep.subr.msk.mxu1 %vm534_vm1, %v337_v11  ;;  %v3509_v16 = vld [vmem:[%s6439_s1 + $0x8] sm:$0xf]  ;;  %v430_v18 = vrot.slane %v4694_v15, 1  ;;  %v4706_v19 = vld [vmem:[%s4655_s9 + $0x20] sm:$0xff]  ;;  %v4710_v21 = vld [vmem:[%s4655_s9 + $0xd8] sm:$0xff]  ;;  %p4513_p5 = scmp.eq.s32.totalorder %s4641_s3, 1 }
  0x1b   : > { %4054 = vmatprep.mubr.msk.f32.mxu0 %vm469_vm3, %v389_v13  ;;  %v4701_v17 = vsel %vm386_vm2, %v427_v9, %v428_v10  ;;  %4152 = vmatprep.subr.msk.mxu0 %vm534_vm1, %v3509_v16  ;;  %v4713_v22 = vld [vmem:[%s4655_s9 + $0xe0] sm:$0xff]  ;;  %v391_v23 = vsel %vm386_vm2, %v388_v5, %v390_v14  ;;  %v393_v24 = vrot.slane %v4706_v19, 1  ;;  %v432_v25 = vrot.slane %v4710_v21, 1  ;;  %v4722_v27 = vld [vmem:[%s4655_s9 + $0x28] sm:$0x3]  ;;  %v4725_v28 = vld [vmem:[%s4655_s9 + $0x30] sm:$0xff] }
  0x1c   : > { %6527 = vst [vmem:[#allocation8_spill] sm:$0xff] %v4701_v17  ;;  %4078 = vmatprep.mubr.msk.f32.mxu1 %vm469_vm3, %v4701_v17  ;;  %v433_v26 = vrot.slane %v4713_v22, 1  ;;  %4055 = vmatmul.mubr.msk.f32.vlgmr.msra.gmra.mxu0 %vm469_vm3, %v391_v23  ;;  %v4729_v29 = vsel %vm386_vm2, %v428_v10, %v430_v18  ;;  %v395_v30 = vrot.slane %v4722_v27, 1  ;;  %v4733_v31 = vld [vmem:[%s4655_s9 + $0xe8] sm:$0x3]  ;;  %v4736_v32 = vld [vmem:[%s4655_s9 + $0x38] sm:$0xff] }
  0x1d   : > { %6528 = vst [vmem:[#allocation9_spill] sm:$0xff] %v4729_v29  ;;  %v397_v33 = vrot.slane %v4725_v28, 1  ;;  %v4740_v34 = vld [vmem:[%s4655_s9 + $0xf0] sm:$0xff]  ;;  %4079 = vmatmul.mubr.msk.f32.vlgmr.msra.gmra.mxu1 %vm469_vm3, %v4729_v29  ;;  %4153 = vmatpush3.msk.msra.mxu0 %vm534_vm1, %v3509_v16  ;;  %v4746_v35 = vsel %vm386_vm2, %v392_v20, %v393_v24  ;;  %v435_v37 = vrot.slane %v4733_v31, 1  ;;  %v398_v38 = vrot.slane %v4736_v32, 1  ;;  %v4754_v39 = vld [vmem:[%s4655_s9 + $0xf8] sm:$0xff] }
  0x1e   : > { %6529 = vst [vmem:[#allocation10_spill] sm:$0xff] %v4746_v35  ;;  %v4749_v36 = vsel %vm386_vm2, %v432_v25, %v433_v26  ;;  %v4757_v40 = vld [vmem:[%s4655_s9 + $0x40] sm:$0x3]  ;;  %v4760_v41 = vld [vmem:[%s4655_s9 + $0x48] sm:$0xff]  ;;  %4103 = vmatpush3.msk.msra.mxu1 %vm534_vm1, %v337_v11  ;;  %4057 = vmatprep.mubr.msk.f32.mxu0 %vm469_vm3, %v4746_v35  ;;  %v4766_v42 = vsel %vm386_vm2, %v393_v24, %v395_v30  ;;  %v437_v43 = vrot.slane %v4740_v34, 1  ;;  %v438_v44 = vrot.slane %v4754_v39, 1 }
  0x1f   : > { %6530 = vst [vmem:[#allocation11_spill] sm:$0xff] %v4749_v36  ;;  %6531 = vst [vmem:[#allocation12_spill] sm:$0xff] %v4766_v42  ;;  %v400_v45 = vrot.slane %v4757_v40, 1  ;;  %v4772_v46 = vld [vmem:[%s4655_s9 + $0x100] sm:$0x3]  ;;  %v4775_v47 = vld [vmem:[%s4655_s9 + $0x50] sm:$0xff]  ;;  %4081 = vmatprep.mubr.msk.f32.mxu1 %vm469_vm3, %v4749_v36  ;;  %v4780_v48 = vsel %vm386_vm2, %v433_v26, %v435_v37  ;;  %v4783_v49 = vsel %vm386_vm2, %v397_v33, %v398_v38 }
  0x20   : > { %6532 = vst [vmem:[#allocation13_spill] sm:$0xff] %v4780_v48  ;;  %6533 = vst [vmem:[#allocation14_spill] sm:$0xff] %v4783_v49  ;;  %v440_v50 = vrot.slane %v4772_v46, 1  ;;  %v402_v51 = vrot.slane %v4760_v41, 1  ;;  %v4788_v52 = vld [vmem:[%s4655_s9 + $0x108] sm:$0xff]  ;;  %v4791_v53 = vld [vmem:[%s4655_s9 + $0x110] sm:$0xff]  ;;  %4058 = vmatmul.mubr.msk.f32.gmra.mxu0 %vm469_vm3, %v4766_v42  ;;  %v4799_v55 = vsel %vm386_vm2, %v437_v43, %v438_v44 }
  0x21   : > { %v4794_v54 = vld [vmem:[%s4655_s9 + $0x58] sm:$0x3]  ;;  %6534 = vst [vmem:[#allocation15_spill] sm:$0xff] %v4799_v55  ;;  %v403_v56 = vrot.slane %v4775_v47, 1  ;;  %v442_v57 = vrot.slane %v4788_v52, 1  ;;  %v4807_v59 = vld [vmem:[%s4655_s9 + $0x60] sm:$0xff]  ;;  %4082 = vmatmul.mubr.msk.f32.gmra.mxu1 %vm469_vm3, %v4780_v48  ;;  %4060 = vmatprep.mubr.msk.f32.mxu0 %vm469_vm3, %v4783_v49  ;;  %v4817_v61 = vsel %vm386_vm2, %v398_v38, %v400_v45 }
  0x22   : > { %v4804_v58 = vld [vmem:[%s4655_s9 + $0x118] sm:$0x3]  ;;  %v4810_v60 = vld [vmem:[%s4655_s9 + $0x68] sm:$0xff]  ;;  %6535 = vst [vmem:[#allocation16_spill] sm:$0xff] %v4817_v61  ;;  %v4820_v62 = vsel %vm386_vm2, %v438_v44, %v440_v50  ;;  %v443_v63 = vrot.slane %v4791_v53, 1  ;;  %v405_v0 = vrot.slane %v4794_v54, 1  ;;  %4084 = vmatprep.mubr.msk.f32.mxu1 %vm469_vm3, %v4799_v55 }
  0x23   : > { %6536 = vst [vmem:[#allocation17_spill] sm:$0xff] %v4820_v62  ;;  %v4825_v1 = vld [vmem:[%s4655_s9 + $0x120] sm:$0xff]  ;;  %v4828_v4 = vld [vmem:[%s4655_s9 + $0x128] sm:$0xff]  ;;  %v4833_v5 = vsel %vm386_vm2, %v402_v51, %v403_v56  ;;  %v445_v9 = vrot.slane %v4804_v58, 1  ;;  %v407_v10 = vrot.slane %v4807_v59, 1  ;;  %v408_v11 = vrot.slane %v4810_v60, 1 }
  0x24   : > { %6537 = vst [vmem:[#allocation18_spill] sm:$0xff] %v4833_v5  ;;  %v4839_v13 = vld [vmem:[%s4655_s9 + $0x70] sm:$0x3]  ;;  %v4842_v14 = vld [vmem:[%s4655_s9 + $0x78] sm:$0xff]  ;;  %v4845_v16 = vsel %vm386_vm2, %v442_v57, %v443_v63  ;;  %v447_v18 = vrot.slane %v4825_v1, 1  ;;  %v448_v20 = vrot.slane %v4828_v4, 1  ;;  %4061 = vmatmul.mubr.msk.f32.gmra.mxu0 %vm469_vm3, %v4817_v61  ;;  %v4868_v30 = vsel %vm386_vm2, %v403_v56, %v405_v0 }
  0x25   : > { %6538 = vst [vmem:[#allocation19_spill] sm:$0xff] %v4845_v16  ;;  %v4850_v23 = vld [vmem:[%s4655_s9 + $0x130] sm:$0x3]  ;;  %v4853_v24 = vld [vmem:[%s4655_s9 + $0x80] sm:$0xff]  ;;  %v4858_v25 = vld [vmem:[%s4655_s9 + $0x138] sm:$0xff]  ;;  %4085 = vmatmul.mubr.msk.f32.gmra.mxu1 %vm469_vm3, %v4820_v62  ;;  %4063 = vmatprep.mubr.msk.f32.mxu0 %vm469_vm3, %v4833_v5  ;;  %v410_v33 = vrot.slane %v4839_v13, 1  ;;  %v4875_v38 = vsel %vm386_vm2, %v443_v63, %v445_v9  ;;  %v4878_v43 = vsel %vm386_vm2, %v407_v10, %v408_v11 }
  0x26   : > { %v4861_v26 = vld [vmem:[%s4655_s9 + $0x140] sm:$0xff]  ;;  %6539 = vst [vmem:[#allocation20_spill] sm:$0xff] %v4868_v30  ;;  %v450_v37 = vrot.slane %v4850_v23, 1  ;;  %4087 = vmatprep.mubr.msk.f32.mxu1 %vm469_vm3, %v4845_v16  ;;  %6540 = vst [vmem:[#allocation21_spill] sm:$0xff] %v4875_v38  ;;  %v412_v44 = vrot.slane %v4842_v14, 1  ;;  %v413_v45 = vrot.slane %v4853_v24, 1  ;;  %v4889_v56 = vsel %vm386_vm2, %v447_v18, %v448_v20 }
  0x27   : > { %6541 = vst [vmem:[#allocation22_spill] sm:$0xff] %v4878_v43  ;;  %v4883_v50 = vld [vmem:[%s4655_s9 + $0x88] sm:$0x3]  ;;  %6542 = vst [vmem:[#allocation23_spill] sm:$0xff] %v4889_v56  ;;  %v452_v57 = vrot.slane %v4858_v25, 1  ;;  %v453_v63 = vrot.slane %v4861_v26, 1  ;;  %v4912_v18 = vsel %vm386_vm2, %v408_v11, %v410_v33 }
  0x28   : > { %v4886_v51 = vld [vmem:[%s4655_s9 + $0x148] sm:$0x3]  ;;  %v4894_v0 = vld [vmem:[%s4655_s9 + $0x90] sm:$0xff]  ;;  %v4897_v9 = vld [vmem:[%s4655_s9 + $0x98] sm:$0xff]  ;;  %4064 = vmatmul.mubr.msk.f32.gmra.mxu0 %vm469_vm3, %v4868_v30  ;;  %6544 = vst [vmem:[#allocation25_spill] sm:$0xff] %v4912_v18  ;;  %v415_v62 = vrot.slane %v4883_v50, 1  ;;  %v4925_v36 = vsel %vm386_vm2, %v412_v44, %v413_v45 }
  0x29   : > { %v4902_v10 = vld [vmem:[%s4655_s9 + $0x150] sm:$0xff]  ;;  %v4905_v16 = vld [vmem:[%s4655_s9 + $0x158] sm:$0xff]  ;;  %4088 = vmatmul.mubr.msk.f32.gmra.mxu1 %vm469_vm3, %v4875_v38  ;;  %4066 = vmatprep.mubr.msk.f32.mxu0 %vm469_vm3, %v4878_v43  ;;  %v455_v55 = vrot.slane %v4886_v51, 1  ;;  %v4917_v48 = vld [vmem:[%s4655_s9 + $0xa0] sm:$0x3]  ;;  %v4922_v38 = vsel %vm386_vm2, %v448_v20, %v450_v37  ;;  %6546 = vst [vmem:[#allocation27_spill] sm:$0xff] %v4925_v36 }
  0x2a   : > { %6543 = vst [vmem:[#allocation24_spill] sm:$0xff] %v4905_v16  ;;  %4090 = vmatprep.mubr.msk.f32.mxu1 %vm469_vm3, %v4889_v56  ;;  %6545 = vst [vmem:[#allocation26_spill] sm:$0xff] %v4922_v38  ;;  %v417_v11 = vrot.slane %v4894_v0, 1  ;;  %v418_v33 = vrot.slane %v4897_v9, 1  ;;  %v4930_v29 = vld [vmem:[%s4655_s9 + $0x160] sm:$0x3]  ;;  %v4938_v56 = vsel %vm386_vm2, %v452_v57, %v453_v63  ;;  %v4967_v61 = vsel %vm386_vm2, %v413_v45, %v415_v62 }
  0x2b   : > { %6547 = vst [vmem:[#allocation28_spill] sm:$0xff] %v4930_v29  ;;  %v4935_v17 = vld [vmem:[%s6439_s1 + $0xc] sm:$0xf]  ;;  %6548 = vst [vmem:[#allocation29_spill] sm:$0xff] %v4938_v56  ;;  %v457_v20 = vrot.slane %v4902_v10, 1  ;;  %v458_v37 = vrot.slane %v4905_v16, 1  ;;  %v4974_v42 = vsel %vm386_vm2, %v453_v63, %v455_v55 }
  0x2c   : > { %v4943_v44 = vld [vmem:[%s4655_s9 + $0xa8] sm:$0xff]  ;;  %v4946_v43 = vld [vmem:[%s4655_s9 + $0xb0] sm:$0xff]  ;;  %4202 = vmatprep.subr.msk.mxu1 %vm534_vm1, %v4935_v17  ;;  %4067 = vmatmul.mubr.msk.f32.gmra.mxu0 %vm469_vm3, %v4912_v18  ;;  %6549 = vst [vmem:[#allocation30_spill] sm:$0xff] %v4967_v61  ;;  %v420_v49 = vrot.slane %v4917_v48, 1  ;;  %v460_v18 = vrot.slane %v4930_v29, 1  ;;  %6550 = vst [vmem:[#allocation31_spill] sm:$0xff] %v4974_v42  ;;  %v4977_v35 = vsel %vm386_vm2, %v417_v11, %v418_v33 }
  0x2d   : > { %v3577_v30 = vld [vmem:[%s6439_s1 + $0x10] sm:$0xf]  ;;  %v4956_v57 = vld [vmem:[%s4655_s9 + $0x168] sm:$0xff]  ;;  %4091 = vmatmul.mubr.msk.f32.gmra.mxu1 %vm469_vm3, %v4922_v38  ;;  %4069 = vmatprep.mubr.msk.f32.mxu0 %vm469_vm3, %v4925_v36  ;;  %6551 = vst [vmem:[#allocation32_spill] sm:$0xff] %v4977_v35  ;;  %v422_v38 = vrot.slane %v4943_v44, 1  ;;  %v423_v36 = vrot.slane %v4946_v43, 1  ;;  %v4985_v62 = vsel %vm386_vm2, %v457_v20, %v458_v37 }
  0x2e   : > { %v4959_v5 = vld [vmem:[%s4655_s9 + $0x170] sm:$0xff]  ;;  %4252 = vmatprep.subr.msk.mxu0 %vm534_vm1, %v3577_v30  ;;  %4093 = vmatprep.mubr.msk.f32.mxu1 %vm469_vm3, %v4938_v56  ;;  %v4982_v16 = vld [vmem:[%s4655_s9 + $0xb8] sm:$0x3]  ;;  %6552 = vst [vmem:[#allocation33_spill] sm:$0xff] %v4985_v62  ;;  %v462_v45 = vrot.slane %v4956_v57, 1  ;;  %v4999_v55 = vsel %vm386_vm2, %v418_v33, %v420_v49  ;;  %v5002_v63 = vsel %vm386_vm2, %v458_v37, %v460_v18  ;;  %v1059_v18 = vrot.slane %v4688_v12, 2 }
  0x2f   : > { %v463_v29 = vrot.slane %v4959_v5, 1  ;;  %v4990_v56 = vld [vmem:[%s4655_s9 + $0x178] sm:$0x3]  ;;  %6553 = vst [vmem:[#allocation34_spill] sm:$0xff] %v4999_v55  ;;  %6554 = vst [vmem:[#allocation35_spill] sm:$0xff] %v5002_v63  ;;  %v425_v11 = vrot.slane %v4982_v16, 1  ;;  %v5008_v20 = vsel %vm386_vm2, %v422_v38, %v423_v36 }
  0x30   : > { %4070 = vmatmul.mubr.msk.f32.gmra.mxu0 %vm469_vm3, %v4967_v61  ;;  %6555 = vst [vmem:[#allocation36_spill] sm:$0xff] %v5008_v20  ;;  %v465_v61 = vrot.slane %v4990_v56, 1  ;;  %v1061_v12 = vrot.slane %v4678_v8, 2 }
  0x31   : > { %4094 = vmatmul.mubr.msk.f32.gmra.mxu1 %vm469_vm3, %v4974_v42  ;;  %4072 = vmatprep.mubr.msk.f32.mxu0 %vm469_vm3, %v4977_v35  ;;  %v1056_v42 = vrot.slane %v4662_v2, 2  ;;  %v1057_v35 = vrot.slane %v4665_v3, 2  ;;  %v5014_v49 = vsel %vm386_vm2, %v462_v45, %v463_v29  ;;  %v5024_v38 = vsel %vm386_vm2, %v423_v36, %v425_v11 }
  0x32   : > { %4096 = vmatprep.mubr.msk.f32.mxu1 %vm469_vm3, %v4985_v62  ;;  %6556 = vst [vmem:[#allocation37_spill] sm:$0xff] %v5014_v49  ;;  %6557 = vst [vmem:[#allocation38_spill] sm:$0xff] %v5024_v38  ;;  %v5029_v33 = vsel %vm386_vm2, %v463_v29, %v465_v61  ;;  %v1062_v45 = vrot.slane %v4706_v19, 2  ;;  %v1064_v11 = vrot.slane %v4722_v27, 2  ;;  %v1066_v29 = vrot.slane %v4725_v28, 2 }
  0x33   : > { %6558 = vst [vmem:[#allocation39_spill] sm:$0xff] %v5029_v33  ;;  %v1058_v37 = vsel %vm1055_vm4, %v1056_v42, %v1057_v35  ;;  %v1060_v36 = vsel %vm1055_vm4, %v1057_v35, %v1059_v18  ;;  %v1067_v42 = vrot.slane %v4736_v32, 2  ;;  %v1069_v27 = vrot.slane %v4757_v40, 2  ;;  %v5064_v35 = vld [vmem:[%s6439_s1 + $0x18] sm:$0xf] }
  0x34   : > { %4073 = vmatmul.mubr.msk.f32.gmra.mxu0 %vm469_vm3, %v4999_v55  ;;  %v5047_v61 = vsel %vm1055_vm4, %v1061_v12, %v1062_v45  ;;  %v1072_v18 = vrot.slane %v4775_v47, 2  ;;  %v1074_v40 = vrot.slane %v4794_v54, 2 }
  0x35   : > { %4097 = vmatmul.mubr.msk.f32.gmra.mxu1 %vm469_vm3, %v5002_v63  ;;  %4075 = vmatprep.mubr.msk.f32.mxu0 %vm469_vm3, %v5008_v20 }
  0x36   : > { %4099 = vmatprep.mubr.msk.f32.mxu1 %vm469_vm3, %v5014_v49  ;;  %v5105_v54 = vsel %vm1055_vm4, %v1072_v18, %v1074_v40  ;;  %v1086_v40 = vrot.slane %v4894_v0, 2 }
  0x38   : > { %4076 = vmatmul.mubr.msk.f32.gmra.mxu0 %vm469_vm3, %v5024_v38 }
  0x39   : > { %4100 = vmatmul.mubr.msk.f32.gmra.mxu1 %vm469_vm3, %v5029_v33  ;;  %4154 = vmatprep.mubr.msk.f32.mxu0 %vm469_vm3, %v1058_v37  ;;  %v5052_v37 = vld [vmem:[%s6439_s1 + $0x14] sm:$0xf] }
  0x3a   : > { %4104 = vmatprep.mubr.msk.f32.mxu1 %vm469_vm3, %v4662_v2  ;;  %v5058_v2 = vsel %vm1055_vm4, %v1062_v45, %v1064_v11  ;;  %v1076_v45 = vrot.slane %v4807_v59, 2  ;;  %v1079_v11 = vrot.slane %v4839_v13, 2 }
  0x3c   : > { %4155 = vmatmul.mubr.msk.f32.vlgmr.msra.gmra.mxu0 %vm469_vm3, %v1060_v36  ;;  %v1077_v36 = vrot.slane %v4810_v60, 2 }
  0x3d   : > { %4105 = vmatmul.mubr.msk.f32.vlgmr.msra.gmra.mxu1 %vm469_vm3, %v4665_v3  ;;  %4253 = vmatpush3.msk.msra.mxu0 %vm534_vm1, %v3577_v30  ;;  %v5071_v3 = vsel %vm1055_vm4, %v1066_v29, %v1067_v42  ;;  %v1071_v30 = vrot.slane %v4760_v41, 2 }
  0x3e   : > { %4203 = vmatpush3.msk.msra.mxu1 %vm534_vm1, %v4935_v17  ;;  %4107 = vmatprep.mubr.msk.f32.mxu1 %vm469_vm3, %v4678_v8  ;;  %v5088_v17 = vsel %vm1055_vm4, %v1067_v42, %v1069_v27  ;;  %v5111_v29 = vsel %vm1055_vm4, %v1076_v45, %v1077_v36  ;;  %v1081_v42 = vrot.slane %v4842_v14, 2  ;;  %v1082_v27 = vrot.slane %v4853_v24, 2 }
  0x3f   : > { %4157 = vmatprep.mubr.msk.f32.mxu0 %vm469_vm3, %v5047_v61  ;;  %4302 = vmatprep.subr.msk.mxu1 %vm534_vm1, %v5052_v37  ;;  %v5094_v12 = vsel %vm1055_vm4, %v1071_v30, %v1072_v18  ;;  %v5122_v13 = vsel %vm1055_vm4, %v1077_v36, %v1079_v11  ;;  %v1084_v30 = vrot.slane %v4883_v50, 2  ;;  %v1087_v45 = vrot.slane %v4897_v9, 2 }
  0x40   : > { %4158 = vmatmul.mubr.msk.f32.gmra.mxu0 %vm469_vm3, %v5058_v2  ;;  %4352 = vmatprep.subr.msk.mxu0 %vm534_vm1, %v5064_v35  ;;  %6559 = vst [vmem:[#allocation40_spill] sm:$0xff] %v5122_v13  ;;  %v5128_v18 = vsel %vm1055_vm4, %v1081_v42, %v1082_v27  ;;  %v1089_v36 = vrot.slane %v4917_v48, 2  ;;  %v1091_v42 = vrot.slane %v4943_v44, 2 }
  0x41   : > { %4108 = vmatmul.mubr.msk.f32.gmra.mxu1 %vm469_vm3, %v4706_v19  ;;  %4160 = vmatprep.mubr.msk.f32.mxu0 %vm469_vm3, %v5071_v3  ;;  %v5139_v50 = vsel %vm1055_vm4, %v1082_v27, %v1084_v30  ;;  %v5145_v11 = vsel %vm1055_vm4, %v1086_v40, %v1087_v45  ;;  %v1094_v27 = vrot.slane %v4982_v16, 2  ;;  %v1096_v40 = vrot.slane %v4672_v6, 2 }
  0x42   : > { %4110 = vmatprep.mubr.msk.f32.mxu1 %vm469_vm3, %v4725_v28  ;;  %6560 = vst [vmem:[#allocation41_spill] sm:$0xff] %v5139_v50  ;;  %v5156_v48 = vsel %vm1055_vm4, %v1087_v45, %v1089_v36  ;;  %v1099_v45 = vrot.slane %v4694_v15, 2 }
  0x43   : > { %6561 = vst [vmem:[#allocation42_spill] sm:$0xff] %v5156_v48 }
  0x44   : > { %4161 = vmatmul.mubr.msk.f32.gmra.mxu0 %vm469_vm3, %v5088_v17 }
  0x45   : > { %4111 = vmatmul.mubr.msk.f32.gmra.mxu1 %vm469_vm3, %v4736_v32  ;;  %4163 = vmatprep.mubr.msk.f32.mxu0 %vm469_vm3, %v5094_v12 }
  0x46   : > { %4113 = vmatprep.mubr.msk.f32.mxu1 %vm469_vm3, %v4760_v41 }
  0x48   : > { %4164 = vmatmul.mubr.msk.f32.gmra.mxu0 %vm469_vm3, %v5105_v54 }
  0x49   : > { %4114 = vmatmul.mubr.msk.f32.gmra.mxu1 %vm469_vm3, %v4775_v47  ;;  %4166 = vmatprep.mubr.msk.f32.mxu0 %vm469_vm3, %v5111_v29 }
  0x4a   : > { %4116 = vmatprep.mubr.msk.f32.mxu1 %vm469_vm3, %v4807_v59 }
  0x4c   : > { %4167 = vmatmul.mubr.msk.f32.gmra.mxu0 %vm469_vm3, %v5122_v13  ;;  %v1092_v13 = vrot.slane %v4946_v43, 2 }
  0x4d   : > { %4117 = vmatmul.mubr.msk.f32.gmra.mxu1 %vm469_vm3, %v4810_v60  ;;  %4169 = vmatprep.mubr.msk.f32.mxu0 %vm469_vm3, %v5128_v18 }
  0x4e   : > { %4119 = vmatprep.mubr.msk.f32.mxu1 %vm469_vm3, %v4842_v14  ;;  %v5162_v30 = vsel %vm1055_vm4, %v1091_v42, %v1092_v13  ;;  %v5173_v16 = vsel %vm1055_vm4, %v1092_v13, %v1094_v27  ;;  %v1101_v42 = vrot.slane %v4710_v21, 2  ;;  %v1104_v13 = vrot.slane %v4733_v31, 2 }
  0x4f   : > { %6562 = vst [vmem:[#allocation43_spill] sm:$0xff] %v5173_v16 }
  0x50   : > { %4170 = vmatmul.mubr.msk.f32.gmra.mxu0 %vm469_vm3, %v5139_v50  ;;  %v1097_v50 = vrot.slane %v4675_v7, 2 }
  0x51   : > { %4120 = vmatmul.mubr.msk.f32.gmra.mxu1 %vm469_vm3, %v4853_v24  ;;  %4172 = vmatprep.mubr.msk.f32.mxu0 %vm469_vm3, %v5145_v11 }
  0x52   : > { %4122 = vmatprep.mubr.msk.f32.mxu1 %vm469_vm3, %v4894_v0  ;;  %v5179_v36 = vsel %vm1055_vm4, %v1096_v40, %v1097_v50  ;;  %v5190_v15 = vsel %vm1055_vm4, %v1097_v50, %v1099_v45  ;;  %v1106_v40 = vrot.slane %v4740_v34, 2  ;;  %v1109_v50 = vrot.slane %v4772_v46, 2 }
  0x53   : > { %6563 = vst [vmem:[#allocation44_spill] sm:$0xff] %v5190_v15 }
  0x54   : > { %4173 = vmatmul.mubr.msk.f32.gmra.mxu0 %vm469_vm3, %v5156_v48  ;;  %v1102_v48 = vrot.slane %v4713_v22, 2 }
  0x55   : > { %4123 = vmatmul.mubr.msk.f32.gmra.mxu1 %vm469_vm3, %v4897_v9  ;;  %4175 = vmatprep.mubr.msk.f32.mxu0 %vm469_vm3, %v5162_v30 }
  0x56   : > { %4125 = vmatprep.mubr.msk.f32.mxu1 %vm469_vm3, %v4943_v44  ;;  %v5196_v27 = vsel %vm1055_vm4, %v1101_v42, %v1102_v48  ;;  %v5207_v31 = vsel %vm1055_vm4, %v1102_v48, %v1104_v13  ;;  %v1111_v42 = vrot.slane %v4788_v52, 2  ;;  %v1114_v48 = vrot.slane %v4804_v58, 2 }
  0x57   : > { %6564 = vst [vmem:[#allocation45_spill] sm:$0xff] %v5207_v31 }
  0x58   : > { %4176 = vmatmul.mubr.msk.f32.gmra.mxu0 %vm469_vm3, %v5173_v16  ;;  %v1107_v16 = vrot.slane %v4754_v39, 2 }
  0x59   : > { %4126 = vmatmul.mubr.msk.f32.gmra.mxu1 %vm469_vm3, %v4946_v43  ;;  %4178 = vmatprep.mubr.msk.f32.mxu0 %vm469_vm3, %v5179_v36 }
  0x5a   : > { %4128 = vmatprep.mubr.msk.f32.mxu1 %vm469_vm3, %v4672_v6  ;;  %v5213_v45 = vsel %vm1055_vm4, %v1106_v40, %v1107_v16  ;;  %v5224_v46 = vsel %vm1055_vm4, %v1107_v16, %v1109_v50  ;;  %v1116_v40 = vrot.slane %v4825_v1, 2  ;;  %v1119_v16 = vrot.slane %v4850_v23, 2 }
  0x5b   : > { %6565 = vst [vmem:[#allocation46_spill] sm:$0xff] %v5224_v46 }
  0x5c   : > { %4179 = vmatmul.mubr.msk.f32.gmra.mxu0 %vm469_vm3, %v5190_v15  ;;  %v1112_v15 = vrot.slane %v4791_v53, 2 }
  0x5d   : > { %4129 = vmatmul.mubr.msk.f32.gmra.mxu1 %vm469_vm3, %v4675_v7  ;;  %4181 = vmatprep.mubr.msk.f32.mxu0 %vm469_vm3, %v5196_v27 }
  0x5e   : > { %4131 = vmatprep.mubr.msk.f32.mxu1 %vm469_vm3, %v4710_v21  ;;  %v5230_v13 = vsel %vm1055_vm4, %v1111_v42, %v1112_v15  ;;  %v5241_v58 = vsel %vm1055_vm4, %v1112_v15, %v1114_v48  ;;  %v1121_v42 = vrot.slane %v4858_v25, 2  ;;  %v1124_v15 = vrot.slane %v4886_v51, 2 }
  0x5f   : > { %6566 = vst [vmem:[#allocation47_spill] sm:$0xff] %v5230_v13  ;;  %6567 = vst [vmem:[#allocation48_spill] sm:$0xff] %v5241_v58 }
  0x60   : > { %4182 = vmatmul.mubr.msk.f32.gmra.mxu0 %vm469_vm3, %v5207_v31  ;;  %v1117_v31 = vrot.slane %v4828_v4, 2 }
  0x61   : > { %4132 = vmatmul.mubr.msk.f32.gmra.mxu1 %vm469_vm3, %v4713_v22  ;;  %4184 = vmatprep.mubr.msk.f32.mxu0 %vm469_vm3, %v5213_v45 }
  0x62   : > { %4134 = vmatprep.mubr.msk.f32.mxu1 %vm469_vm3, %v4740_v34  ;;  %v5247_v50 = vsel %vm1055_vm4, %v1116_v40, %v1117_v31  ;;  %v5258_v23 = vsel %vm1055_vm4, %v1117_v31, %v1119_v16  ;;  %v1126_v40 = vrot.slane %v4902_v10, 2  ;;  %v6571_v31 = vld [vmem:[#allocation28_spill] sm:$0xff] }
  0x63   : > { %6568 = vst [vmem:[#allocation49_spill] sm:$0xff] %v5247_v50  ;;  %6569 = vst [vmem:[#allocation50_spill] sm:$0xff] %v5258_v23  ;;  %v1129_v16 = vrot.slane %v6571_v31, 2  ;;  %v5333_v31 = vld [vmem:[%s6439_s1 + $0x20] sm:$0xf] }
  0x64   : > { %4185 = vmatmul.mubr.msk.f32.gmra.mxu0 %vm469_vm3, %v5224_v46  ;;  %v1122_v46 = vrot.slane %v4861_v26, 2 }
  0x65   : > { %4135 = vmatmul.mubr.msk.f32.gmra.mxu1 %vm469_vm3, %v4754_v39  ;;  %4187 = vmatprep.mubr.msk.f32.mxu0 %vm469_vm3, %v5230_v13 }
  0x66   : > { %4137 = vmatprep.mubr.msk.f32.mxu1 %vm469_vm3, %v4788_v52  ;;  %v5264_v48 = vsel %vm1055_vm4, %v1121_v42, %v1122_v46  ;;  %v5275_v51 = vsel %vm1055_vm4, %v1122_v46, %v1124_v15  ;;  %v1134_v15 = vrot.slane %v4990_v56, 2  ;;  %v6573_v56 = vld [vmem:[#allocation10_spill] sm:$0xff] }
  0x68   : > { %4188 = vmatmul.mubr.msk.f32.gmra.mxu0 %vm469_vm3, %v5241_v58  ;;  %v6570_v58 = vld [vmem:[#allocation24_spill] sm:$0xff] }
  0x69   : > { %4138 = vmatmul.mubr.msk.f32.gmra.mxu1 %vm469_vm3, %v4791_v53  ;;  %4190 = vmatprep.mubr.msk.f32.mxu0 %vm469_vm3, %v5247_v50  ;;  %v1127_v13 = vrot.slane %v6570_v58, 2  ;;  %v1131_v50 = vrot.slane %v4956_v57, 2 }
  0x6a   : > { %4140 = vmatprep.mubr.msk.f32.mxu1 %vm469_vm3, %v4825_v1 }
  0x6b   : > { %v5281_v42 = vsel %vm1055_vm4, %v1126_v40, %v1127_v13  ;;  %v5292_v46 = vsel %vm1055_vm4, %v1127_v13, %v1129_v16  ;;  %v6579_v16 = vld [vmem:[#allocation22_spill] sm:$0xff] }
  0x6c   : > { %4191 = vmatmul.mubr.msk.f32.gmra.mxu0 %vm469_vm3, %v5258_v23  ;;  %v1132_v23 = vrot.slane %v4959_v5, 2 }
  0x6d   : > { %4141 = vmatmul.mubr.msk.f32.gmra.mxu1 %vm469_vm3, %v4828_v4  ;;  %4193 = vmatprep.mubr.msk.f32.mxu0 %vm469_vm3, %v5264_v48 }
  0x6e   : > { %4143 = vmatprep.mubr.msk.f32.mxu1 %vm469_vm3, %v4858_v25  ;;  %v5298_v40 = vsel %vm1055_vm4, %v1131_v50, %v1132_v23  ;;  %v5307_v13 = vsel %vm1055_vm4, %v1132_v23, %v1134_v15  ;;  %v6574_v50 = vld [vmem:[#allocation12_spill] sm:$0xff]  ;;  %v5324_v23 = vld [vmem:[%s6439_s1 + $0x1c] sm:$0xf]  ;;  %v6580_v15 = vld [vmem:[#allocation25_spill] sm:$0xff] }
  0x6f   : > { %6572 = vst [vmem:[#allocation24_spill] sm:$0xff] %v5307_v13 }
  0x70   : > { %4194 = vmatmul.mubr.msk.f32.gmra.mxu0 %vm469_vm3, %v5275_v51 }
  0x71   : > { %4144 = vmatmul.mubr.msk.f32.gmra.mxu1 %vm469_vm3, %v4861_v26  ;;  %4196 = vmatprep.mubr.msk.f32.mxu0 %vm469_vm3, %v5281_v42 }
  0x72   : > { %4146 = vmatprep.mubr.msk.f32.mxu1 %vm469_vm3, %v4902_v10 }
  0x74   : > { %4197 = vmatmul.mubr.msk.f32.gmra.mxu0 %vm469_vm3, %v5292_v46 }
  0x75   : > { %4147 = vmatmul.mubr.msk.f32.gmra.mxu1 %vm469_vm3, %v6570_v58  ;;  %4199 = vmatprep.mubr.msk.f32.mxu0 %vm469_vm3, %v5298_v40 }
  0x76   : > { %4149 = vmatprep.mubr.msk.f32.mxu1 %vm469_vm3, %v4956_v57 }
  0x78   : > { %4200 = vmatmul.mubr.msk.f32.gmra.mxu0 %vm469_vm3, %v5307_v13 }
  0x79   : > { %4150 = vmatmul.mubr.msk.f32.gmra.mxu1 %vm469_vm3, %v4959_v5  ;;  %4254 = vmatprep.mubr.msk.f32.mxu0 %vm469_vm3, %v6573_v56  ;;  %v6581_v56 = vld [vmem:[#allocation27_spill] sm:$0xff] }
  0x7a   : > { %4204 = vmatprep.mubr.msk.f32.mxu1 %vm469_vm3, %v4678_v8  ;;  %v6575_v8 = vld [vmem:[#allocation14_spill] sm:$0xff] }
  0x7c   : > { %4255 = vmatmul.mubr.msk.f32.vlgmr.msra.gmra.mxu0 %vm469_vm3, %v6574_v50  ;;  %v6582_v50 = vld [vmem:[#allocation30_spill] sm:$0xff] }
  0x7d   : > { %4205 = vmatmul.mubr.msk.f32.vlgmr.msra.gmra.mxu1 %vm469_vm3, %v4706_v19  ;;  %4353 = vmatpush3.msk.msra.mxu0 %vm534_vm1, %v5064_v35  ;;  %v6576_v19 = vld [vmem:[#allocation16_spill] sm:$0xff]  ;;  %v6577_v35 = vld [vmem:[#allocation18_spill] sm:$0xff] }
  0x7e   : > { %4303 = vmatpush3.msk.msra.mxu1 %vm534_vm1, %v5052_v37  ;;  %4207 = vmatprep.mubr.msk.f32.mxu1 %vm469_vm3, %v4725_v28  ;;  %v6578_v37 = vld [vmem:[#allocation20_spill] sm:$0xff] }
  0x7f   : > { %4257 = vmatprep.mubr.msk.f32.mxu0 %vm469_vm3, %v6575_v8  ;;  %4402 = vmatprep.subr.msk.mxu1 %vm534_vm1, %v5324_v23 }
  0x80   : > { %4258 = vmatmul.mubr.msk.f32.gmra.mxu0 %vm469_vm3, %v6576_v19  ;;  %4452 = vmatprep.subr.msk.mxu0 %vm534_vm1, %v5333_v31 }
  0x81   : > { %4208 = vmatmul.mubr.msk.f32.gmra.mxu1 %vm469_vm3, %v4736_v32  ;;  %4260 = vmatprep.mubr.msk.f32.mxu0 %vm469_vm3, %v6577_v35 }
  0x82   : > { %4210 = vmatprep.mubr.msk.f32.mxu1 %vm469_vm3, %v4760_v41 }
  0x84   : > { %4261 = vmatmul.mubr.msk.f32.gmra.mxu0 %vm469_vm3, %v6578_v37 }
  0x85   : > { %4211 = vmatmul.mubr.msk.f32.gmra.mxu1 %vm469_vm3, %v4775_v47  ;;  %4263 = vmatprep.mubr.msk.f32.mxu0 %vm469_vm3, %v6579_v16  ;;  %v6583_v16 = vld [vmem:[#allocation32_spill] sm:$0xff] }
  0x86   : > { %4213 = vmatprep.mubr.msk.f32.mxu1 %vm469_vm3, %v4807_v59 }
  0x88   : > { %4264 = vmatmul.mubr.msk.f32.gmra.mxu0 %vm469_vm3, %v6580_v15 }
  0x89   : > { %4214 = vmatmul.mubr.msk.f32.gmra.mxu1 %vm469_vm3, %v4810_v60  ;;  %4266 = vmatprep.mubr.msk.f32.mxu0 %vm469_vm3, %v6581_v56  ;;  %v5450_v56 = vld [vmem:[%s4655_s9 + $0x190] sm:$0x3] }
  0x8a   : > { %4216 = vmatprep.mubr.msk.f32.mxu1 %vm469_vm3, %v4842_v14 }
  0x8c   : > { %4267 = vmatmul.mubr.msk.f32.gmra.mxu0 %vm469_vm3, %v6582_v50  ;;  %v5437_v50 = vld [vmem:[%s4655_s9 + $0x188] sm:$0xff] }
  0x8d   : > { %4217 = vmatmul.mubr.msk.f32.gmra.mxu1 %vm469_vm3, %v4853_v24  ;;  %4269 = vmatprep.mubr.msk.f32.mxu0 %vm469_vm3, %v6583_v16  ;;  %v6584_v16 = vld [vmem:[#allocation8_spill] sm:$0xff] }
  0x8e   : > { %4219 = vmatprep.mubr.msk.f32.mxu1 %vm469_vm3, %v4894_v0 }
  0x90   : > { %4270 = vmatmul.mubr.msk.f32.gmra.mxu0 %vm469_vm3, %v4999_v55  ;;  %v6585_v55 = vld [vmem:[#allocation9_spill] sm:$0xff] }
  0x91   : > { %4220 = vmatmul.mubr.msk.f32.gmra.mxu1 %vm469_vm3, %v4897_v9  ;;  %4272 = vmatprep.mubr.msk.f32.mxu0 %vm469_vm3, %v5008_v20  ;;  %v6586_v20 = vld [vmem:[#allocation11_spill] sm:$0xff] }
  0x92   : > { %4222 = vmatprep.mubr.msk.f32.mxu1 %vm469_vm3, %v4943_v44 }
  0x94   : > { %4273 = vmatmul.mubr.msk.f32.gmra.mxu0 %vm469_vm3, %v5024_v38  ;;  %v6587_v38 = vld [vmem:[#allocation13_spill] sm:$0xff] }
  0x95   : > { %4223 = vmatmul.mubr.msk.f32.gmra.mxu1 %vm469_vm3, %v4946_v43  ;;  %4275 = vmatprep.mubr.msk.f32.mxu0 %vm469_vm3, %v6584_v16  ;;  %v6588_v16 = vld [vmem:[#allocation15_spill] sm:$0xff] }
  0x96   : > { %4225 = vmatprep.mubr.msk.f32.mxu1 %vm469_vm3, %v4672_v6 }
  0x98   : > { %4276 = vmatmul.mubr.msk.f32.gmra.mxu0 %vm469_vm3, %v6585_v55  ;;  %v6589_v55 = vld [vmem:[#allocation17_spill] sm:$0xff] }
  0x99   : > { %4226 = vmatmul.mubr.msk.f32.gmra.mxu1 %vm469_vm3, %v4675_v7  ;;  %4278 = vmatprep.mubr.msk.f32.mxu0 %vm469_vm3, %v6586_v20  ;;  %v6590_v20 = vld [vmem:[#allocation19_spill] sm:$0xff] }
  0x9a   : > { %4228 = vmatprep.mubr.msk.f32.mxu1 %vm469_vm3, %v4710_v21 }
  0x9c   : > { %4279 = vmatmul.mubr.msk.f32.gmra.mxu0 %vm469_vm3, %v6587_v38  ;;  %v6591_v38 = vld [vmem:[#allocation21_spill] sm:$0xff] }
  0x9d   : > { %4229 = vmatmul.mubr.msk.f32.gmra.mxu1 %vm469_vm3, %v4713_v22  ;;  %4281 = vmatprep.mubr.msk.f32.mxu0 %vm469_vm3, %v6588_v16  ;;  %v6592_v16 = vld [vmem:[#allocation23_spill] sm:$0xff] }
  0x9e   : > { %4231 = vmatprep.mubr.msk.f32.mxu1 %vm469_vm3, %v4740_v34 }
  0xa0   : > { %4282 = vmatmul.mubr.msk.f32.gmra.mxu0 %vm469_vm3, %v6589_v55  ;;  %v6593_v55 = vld [vmem:[#allocation26_spill] sm:$0xff] }
  0xa1   : > { %4232 = vmatmul.mubr.msk.f32.gmra.mxu1 %vm469_vm3, %v4754_v39  ;;  %4284 = vmatprep.mubr.msk.f32.mxu0 %vm469_vm3, %v6590_v20  ;;  %v6594_v20 = vld [vmem:[#allocation29_spill] sm:$0xff] }
  0xa2   : > { %4234 = vmatprep.mubr.msk.f32.mxu1 %vm469_vm3, %v4788_v52 }
  0xa4   : > { %4285 = vmatmul.mubr.msk.f32.gmra.mxu0 %vm469_vm3, %v6591_v38  ;;  %v5434_v38 = vld [vmem:[%s4655_s9 + $0x180] sm:$0xff] }
  0xa5   : > { %4235 = vmatmul.mubr.msk.f32.gmra.mxu1 %vm469_vm3, %v4791_v53  ;;  %4287 = vmatprep.mubr.msk.f32.mxu0 %vm469_vm3, %v6592_v16  ;;  %v6595_v16 = vld [vmem:[#allocation31_spill] sm:$0xff] }
  0xa6   : > { %4237 = vmatprep.mubr.msk.f32.mxu1 %vm469_vm3, %v4825_v1 }
  0xa8   : > { %4288 = vmatmul.mubr.msk.f32.gmra.mxu0 %vm469_vm3, %v6593_v55  ;;  %v1732_v55 = vrot.slane %v5437_v50, 1 }
  0xa9   : > { %4238 = vmatmul.mubr.msk.f32.gmra.mxu1 %vm469_vm3, %v4828_v4  ;;  %4290 = vmatprep.mubr.msk.f32.mxu0 %vm469_vm3, %v6594_v20  ;;  %v1731_v20 = vrot.slane %v5434_v38, 1 }
  0xaa   : > { %4240 = vmatprep.mubr.msk.f32.mxu1 %vm469_vm3, %v4858_v25 }
  0xac   : > { %4291 = vmatmul.mubr.msk.f32.gmra.mxu0 %vm469_vm3, %v6595_v16  ;;  %v5462_v16 = vsel %vm386_vm2, %v1731_v20, %v1732_v55  ;;  %v6608_v20 = vld [vmem:[#allocation50_spill] sm:$0xff] }
  0xad   : > { %4241 = vmatmul.mubr.msk.f32.gmra.mxu1 %vm469_vm3, %v4861_v26  ;;  %4293 = vmatprep.mubr.msk.f32.mxu0 %vm469_vm3, %v4985_v62  ;;  %v1734_v62 = vrot.slane %v5450_v56, 1  ;;  %6596 = vst [vmem:[#allocation28_spill] sm:$0xff] %v5462_v16 }
  0xae   : > { %4243 = vmatprep.mubr.msk.f32.mxu1 %vm469_vm3, %v4902_v10 }
  0xb0   : > { %4294 = vmatmul.mubr.msk.f32.gmra.mxu0 %vm469_vm3, %v5002_v63  ;;  %v5471_v63 = vsel %vm386_vm2, %v1732_v55, %v1734_v62 }
  0xb1   : > { %4244 = vmatmul.mubr.msk.f32.gmra.mxu1 %vm469_vm3, %v6570_v58  ;;  %4296 = vmatprep.mubr.msk.f32.mxu0 %vm469_vm3, %v5014_v49  ;;  %6597 = vst [vmem:[#allocation10_spill] sm:$0xff] %v5471_v63 }
  0xb2   : > { %4246 = vmatprep.mubr.msk.f32.mxu1 %vm469_vm3, %v4956_v57 }
  0xb4   : > { %4297 = vmatmul.mubr.msk.f32.gmra.mxu0 %vm469_vm3, %v5029_v33  ;;  %v5648_v33 = vld [vmem:[%s4655_s9 + $0x198] sm:$0xff] }
  0xb5   : > { %4247 = vmatmul.mubr.msk.f32.gmra.mxu1 %vm469_vm3, %v4959_v5  ;;  %4299 = vmatprep.mubr.msk.f32.mxu0 %vm469_vm3, %v5462_v16 }
  0xb6   : > { %4249 = vmatprep.mubr.msk.f32.mxu1 %vm469_vm3, %v5434_v38 }
  0xb8   : > { %4300 = vmatmul.mubr.msk.f32.gmra.mxu0 %vm469_vm3, %v5471_v63 }
  0xb9   : > { %4250 = vmatmul.mubr.msk.f32.gmra.mxu1 %vm469_vm3, %v5437_v50  ;;  %4354 = vmatprep.mubr.msk.f32.mxu0 %vm469_vm3, %v4725_v28  ;;  %v6598_v28 = vld [vmem:[#allocation40_spill] sm:$0xff] }
  0xba   : > { %4304 = vmatprep.mubr.msk.f32.mxu1 %vm469_vm3, %v5047_v61 }
  0xbc   : > { %4355 = vmatmul.mubr.msk.f32.vlgmr.msra.gmra.mxu0 %vm469_vm3, %v4736_v32  ;;  %v6599_v32 = vld [vmem:[#allocation41_spill] sm:$0xff] }
  0xbd   : > { %4305 = vmatmul.mubr.msk.f32.vlgmr.msra.gmra.mxu1 %vm469_vm3, %v5058_v2  ;;  %4453 = vmatpush3.msk.msra.mxu0 %vm534_vm1, %v5333_v31 }
  0xbe   : > { %4403 = vmatpush3.msk.msra.mxu1 %vm534_vm1, %v5324_v23  ;;  %4307 = vmatprep.mubr.msk.f32.mxu1 %vm469_vm3, %v5071_v3  ;;  %v2002_v23 = vrot.slane %v5434_v38, 2 }
  0xbf   : > { %4357 = vmatprep.mubr.msk.f32.mxu0 %vm469_vm3, %v4760_v41  ;;  %v6600_v41 = vld [vmem:[#allocation42_spill] sm:$0xff] }
  0xc0   : > { %4358 = vmatmul.mubr.msk.f32.gmra.mxu0 %vm469_vm3, %v4775_v47  ;;  %v6601_v47 = vld [vmem:[#allocation43_spill] sm:$0xff] }
  0xc1   : > { %4308 = vmatmul.mubr.msk.f32.gmra.mxu1 %vm469_vm3, %v5088_v17  ;;  %4360 = vmatprep.mubr.msk.f32.mxu0 %vm469_vm3, %v4807_v59  ;;  %v6602_v59 = vld [vmem:[#allocation44_spill] sm:$0xff] }
  0xc2   : > { %4310 = vmatprep.mubr.msk.f32.mxu1 %vm469_vm3, %v5094_v12 }
  0xc4   : > { %4361 = vmatmul.mubr.msk.f32.gmra.mxu0 %vm469_vm3, %v4810_v60 }
  0xc5   : > { %4311 = vmatmul.mubr.msk.f32.gmra.mxu1 %vm469_vm3, %v5105_v54  ;;  %4363 = vmatprep.mubr.msk.f32.mxu0 %vm469_vm3, %v4842_v14  ;;  %v6604_v14 = vld [vmem:[#allocation46_spill] sm:$0xff] }
  0xc6   : > { %4313 = vmatprep.mubr.msk.f32.mxu1 %vm469_vm3, %v5111_v29 }
  0xc8   : > { %4364 = vmatmul.mubr.msk.f32.gmra.mxu0 %vm469_vm3, %v4853_v24  ;;  %v6605_v24 = vld [vmem:[#allocation47_spill] sm:$0xff] }
  0xc9   : > { %4314 = vmatmul.mubr.msk.f32.gmra.mxu1 %vm469_vm3, %v6598_v28  ;;  %4366 = vmatprep.mubr.msk.f32.mxu0 %vm469_vm3, %v4894_v0 }
  0xca   : > { %4316 = vmatprep.mubr.msk.f32.mxu1 %vm469_vm3, %v5128_v18 }
  0xcc   : > { %4367 = vmatmul.mubr.msk.f32.gmra.mxu0 %vm469_vm3, %v4897_v9  ;;  %v6606_v9 = vld [vmem:[#allocation48_spill] sm:$0xff] }
  0xcd   : > { %4317 = vmatmul.mubr.msk.f32.gmra.mxu1 %vm469_vm3, %v6599_v32  ;;  %4369 = vmatprep.mubr.msk.f32.mxu0 %vm469_vm3, %v4943_v44  ;;  %v6607_v44 = vld [vmem:[#allocation49_spill] sm:$0xff] }
  0xce   : > { %4319 = vmatprep.mubr.msk.f32.mxu1 %vm469_vm3, %v5145_v11 }
  0xd0   : > { %4370 = vmatmul.mubr.msk.f32.gmra.mxu0 %vm469_vm3, %v4946_v43 }
  0xd1   : > { %4320 = vmatmul.mubr.msk.f32.gmra.mxu1 %vm469_vm3, %v6600_v41  ;;  %4372 = vmatprep.mubr.msk.f32.mxu0 %vm469_vm3, %v4672_v6 }
  0xd2   : > { %4322 = vmatprep.mubr.msk.f32.mxu1 %vm469_vm3, %v5162_v30 }
  0xd4   : > { %4373 = vmatmul.mubr.msk.f32.gmra.mxu0 %vm469_vm3, %v4675_v7 }
  0xd5   : > { %4323 = vmatmul.mubr.msk.f32.gmra.mxu1 %vm469_vm3, %v6601_v47  ;;  %4375 = vmatprep.mubr.msk.f32.mxu0 %vm469_vm3, %v4710_v21  ;;  %v6603_v21 = vld [vmem:[#allocation45_spill] sm:$0xff] }
  0xd6   : > { %4325 = vmatprep.mubr.msk.f32.mxu1 %vm469_vm3, %v5179_v36 }
  0xd8   : > { %4376 = vmatmul.mubr.msk.f32.gmra.mxu0 %vm469_vm3, %v4713_v22 }
  0xd9   : > { %4326 = vmatmul.mubr.msk.f32.gmra.mxu1 %vm469_vm3, %v6602_v59  ;;  %4378 = vmatprep.mubr.msk.f32.mxu0 %vm469_vm3, %v4740_v34 }
  0xda   : > { %4328 = vmatprep.mubr.msk.f32.mxu1 %vm469_vm3, %v5196_v27 }
  0xdc   : > { %v5551_v6 = vpop.f32.mrf.mxu0  ;;  %4379 = vmatmul.mubr.msk.f32.gmra.mxu0 %vm469_vm3, %v4754_v39 }
  0xdd   : > { %v5555_v7 = vpop.f32.mrf.mxu1  ;;  %4329 = vmatmul.mubr.msk.f32.gmra.mxu1 %vm469_vm3, %v6603_v21  ;;  %4381 = vmatprep.mubr.msk.f32.mxu0 %vm469_vm3, %v4788_v52 }
  0xde   : > { %v5561_v22 = vpop.f32.mrf.mxu0  ;;  %4331 = vmatprep.mubr.msk.f32.mxu1 %vm469_vm3, %v5213_v45 }
  0xdf   : > { %v5565_v34 = vpop.f32.mrf.mxu1 }
  0xe0   : > { %v5567_v60 = vpop.f32.mrf.mxu0  ;;  %4382 = vmatmul.mubr.msk.f32.gmra.mxu0 %vm469_vm3, %v4791_v53 }
  0xe1   : > { %v5571_v39 = vpop.f32.mrf.mxu1  ;;  %4332 = vmatmul.mubr.msk.f32.gmra.mxu1 %vm469_vm3, %v6604_v14  ;;  %4384 = vmatprep.mubr.msk.f32.mxu0 %vm469_vm3, %v4825_v1 }
  0xe2   : > { %v5577_v52 = vpop.f32.mrf.mxu0  ;;  %4334 = vmatprep.mubr.msk.f32.mxu1 %vm469_vm3, %v6605_v24 }
  0xe3   : > { %v5581_v43 = vpop.f32.mrf.mxu1 }
  0xe4   : > { %v5583_v0 = vpop.f32.mrf.mxu0  ;;  %4385 = vmatmul.mubr.msk.f32.gmra.mxu0 %vm469_vm3, %v4828_v4 }
  0xe5   : > { %v5587_v53 = vpop.f32.mrf.mxu1  ;;  %4335 = vmatmul.mubr.msk.f32.gmra.mxu1 %vm469_vm3, %v6606_v9  ;;  %4387 = vmatprep.mubr.msk.f32.mxu0 %vm469_vm3, %v4858_v25 }
  0xe6   : > { %v5593_v1 = vpop.f32.mrf.mxu0  ;;  %4337 = vmatprep.mubr.msk.f32.mxu1 %vm469_vm3, %v6607_v44 }
  0xe7   : > { %v5597_v62 = vpop.f32.mrf.mxu1 }
  0xe8   : > { %v5599_v55 = vpop.f32.mrf.mxu0  ;;  %4388 = vmatmul.mubr.msk.f32.gmra.mxu0 %vm469_vm3, %v4861_v26 }
  0xe9   : > { %v5603_v4 = vpop.f32.mrf.mxu1  ;;  %4338 = vmatmul.mubr.msk.f32.gmra.mxu1 %vm469_vm3, %v6608_v20  ;;  %4390 = vmatprep.mubr.msk.f32.mxu0 %vm469_vm3, %v4902_v10 }
  0xea   : > { %v5609_v25 = vpop.f32.mrf.mxu0  ;;  %4340 = vmatprep.mubr.msk.f32.mxu1 %vm469_vm3, %v5264_v48 }
  0xeb   : > { %v5613_v61 = vpop.f32.mrf.mxu1 }
  0xec   : > { %v5615_v2 = vpop.f32.mrf.mxu0  ;;  %4391 = vmatmul.mubr.msk.f32.gmra.mxu0 %vm469_vm3, %v6570_v58  ;;  %v2003_v58 = vrot.slane %v5437_v50, 2 }
  0xed   : > { %v5619_v26 = vpop.f32.mrf.mxu1  ;;  %4341 = vmatmul.mubr.msk.f32.gmra.mxu1 %vm469_vm3, %v5275_v51  ;;  %4393 = vmatprep.mubr.msk.f32.mxu0 %vm469_vm3, %v4956_v57 }
  0xee   : > { %6609 = vst [vmem:[#allocation12_spill] sm:$0xff] %v5619_v26  ;;  %v5625_v10 = vpop.f32.mrf.mxu0  ;;  %4343 = vmatprep.mubr.msk.f32.mxu1 %vm469_vm3, %v5281_v42  ;;  %v5667_v26 = vld [vmem:[%s4655_s9 + $0x1a0] sm:$0xff] }
  0xef   : > { %v5630_v31 = vpop.f32.mrf.mxu1 }
  0xf0   : > { %6610 = vst [vmem:[#allocation14_spill] sm:$0xff] %v5630_v31  ;;  %v5633_v63 = vpop.f32.mrf.mxu0  ;;  %4394 = vmatmul.mubr.msk.f32.gmra.mxu0 %vm469_vm3, %v4959_v5  ;;  %v2005_v31 = vrot.slane %v5450_v56, 2  ;;  %v5654_v5 = vsel %vm1055_vm4, %v2002_v23, %v2003_v58 }
  0xf1   : > { %v5637_v16 = vpop.f32.mrf.mxu1  ;;  %4344 = vmatmul.mubr.msk.f32.gmra.mxu1 %vm469_vm3, %v5292_v46  ;;  %4396 = vmatprep.mubr.msk.f32.mxu0 %vm469_vm3, %v5434_v38  ;;  %6613 = vst [vmem:[#allocation20_spill] sm:$0xff] %v5654_v5 }
  0xf2   : > { %6611 = vst [vmem:[#allocation16_spill] sm:$0xff] %v5637_v16  ;;  %v5643_v57 = vpop.f32.mrf.mxu0  ;;  %4346 = vmatprep.mubr.msk.f32.mxu1 %vm469_vm3, %v5298_v40  ;;  %v5674_v23 = vsel %vm1055_vm4, %v2003_v58, %v2005_v31 }
  0xf3   : > { %v5651_v49 = vpop.f32.mrf.mxu1  ;;  %6615 = vst [vmem:[#allocation40_spill] sm:$0xff] %v5674_v23 }
  0xf4   : > { %6612 = vst [vmem:[#allocation18_spill] sm:$0xff] %v5651_v49  ;;  %v5656_v16 = vpop.f32.mrf.mxu0  ;;  %4397 = vmatmul.mubr.msk.f32.gmra.mxu0 %vm469_vm3, %v5437_v50 }
  0xf5   : > { %v5660_v38 = vpop.f32.mrf.mxu1  ;;  %4347 = vmatmul.mubr.msk.f32.gmra.mxu1 %vm469_vm3, %v5307_v13  ;;  %4399 = vmatprep.mubr.msk.f32.mxu0 %vm469_vm3, %v5648_v33 }
  0xf6   : > { %6614 = vst [vmem:[#allocation25_spill] sm:$0xff] %v5660_v38  ;;  %v5669_v56 = vpop.f32.mrf.mxu0  ;;  %4349 = vmatprep.mubr.msk.f32.mxu1 %vm469_vm3, %v5654_v5 }
  0xf7   : > { %v5676_v49 = vpop.f32.mrf.mxu1 }
  0xf8   : > { %6616 = vst [vmem:[#allocation41_spill] sm:$0xff] %v5676_v49  ;;  %v5678_v50 = vpop.f32.mrf.mxu0  ;;  %4400 = vmatmul.mubr.msk.f32.gmra.mxu0 %vm469_vm3, %v5667_v26 }
  0xf9   : > { %v5682_v38 = vpop.f32.mrf.mxu1  ;;  %4350 = vmatmul.mubr.msk.f32.gmra.mxu1 %vm469_vm3, %v5674_v23  ;;  %4454 = vmatprep.mubr.msk.f32.mxu0 %vm469_vm3, %v5071_v3 }
  0xfa   : > { %6617 = vst [vmem:[#allocation42_spill] sm:$0xff] %v5682_v38  ;;  %v5688_v13 = vpop.f32.mrf.mxu0  ;;  %4404 = vmatprep.mubr.msk.f32.mxu1 %vm469_vm3, %v6575_v8 }
  0xfb   : > { %v5692_v31 = vpop.f32.mrf.mxu1 }
  0xfc   : > { %6618 = vst [vmem:[#allocation43_spill] sm:$0xff] %v5692_v31  ;;  %v4156_v58 = vpop.f32.mrf.mxu0  ;;  %4455 = vmatmul.mubr.msk.f32.vlgmr.msra.gmra.mxu0 %vm469_vm3, %v5088_v17 }
  0xfd   : > { %v4106_v49 = vpop.f32.mrf.mxu1  ;;  %4405 = vmatmul.mubr.msk.f32.vlgmr.msra.gmra.mxu1 %vm469_vm3, %v6576_v19  ;;  %4457 = vmatprep.mubr.msk.f32.mxu0 %vm469_vm3, %v5094_v12 }
  0xfe   : > { %v902_v3 = vadd.f32 %v4106_v49, %v5551_v6  ;;  %v1271_v38 = vpop.f32.mrf.mxu0  ;;  %4407 = vmatprep.mubr.msk.f32.mxu1 %vm469_vm3, %v6577_v35  ;;  %v6619_v35 = vld [vmem:[#allocation22_spill] sm:$0xff] }
  0xff   : > { %v896_v8 = vpop.f32.mrf.mxu1 }
 0x100   : > { %v5703_v23 = vadd.f32 %v4156_v58, %v902_v3  ;;  %v897_v31 = vadd.f32 %v896_v8, %v5561_v22  ;;  %v4159_v5 = vpop.f32.mrf.mxu0  ;;  %4458 = vmatmul.mubr.msk.f32.gmra.mxu0 %vm469_vm3, %v5105_v54  ;;  %v6621_v8 = vld [vmem:[#allocation30_spill] sm:$0xff] }
 0x101   : > { %v4109_v17 = vpop.f32.mrf.mxu1  ;;  %4408 = vmatmul.mubr.msk.f32.gmra.mxu1 %vm469_vm3, %v6578_v37  ;;  %4460 = vmatprep.mubr.msk.f32.mxu0 %vm469_vm3, %v5111_v29 }
 0x102   : > { %v5712_v49 = vadd.f32 %v1271_v38, %v897_v31  ;;  %v912_v12 = vadd.f32 %v4109_v17, %v5567_v60  ;;  %v1281_v19 = vpop.f32.mrf.mxu0  ;;  %4410 = vmatprep.mubr.msk.f32.mxu1 %vm469_vm3, %v6619_v35 }
 0x103   : > { %v906_v6 = vpop.f32.mrf.mxu1 }
 0x104   : > { %v5717_v22 = vadd.f32 %v4159_v5, %v912_v12  ;;  %v907_v54 = vadd.f32 %v906_v6, %v5577_v52  ;;  %v4162_v58 = vpop.f32.mrf.mxu0  ;;  %4461 = vmatmul.mubr.msk.f32.gmra.mxu0 %vm469_vm3, %v6598_v28  ;;  %v6620_v5 = vld [vmem:[#allocation27_spill] sm:$0xff]  ;;  %v6622_v12 = vld [vmem:[#allocation32_spill] sm:$0xff] }
 0x105   : > { %v4112_v37 = vpop.f32.mrf.mxu1  ;;  %4411 = vmatmul.mubr.msk.f32.gmra.mxu1 %vm469_vm3, %v6580_v15  ;;  %4463 = vmatprep.mubr.msk.f32.mxu0 %vm469_vm3, %v5128_v18 }
 0x106   : > { %v5726_v29 = vadd.f32 %v1281_v19, %v907_v54  ;;  %v922_v60 = vadd.f32 %v4112_v37, %v5583_v0  ;;  %v1291_v38 = vpop.f32.mrf.mxu0  ;;  %4413 = vmatprep.mubr.msk.f32.mxu1 %vm469_vm3, %v6620_v5  ;;  %v6623_v54 = vld [vmem:[#allocation34_spill] sm:$0xff]  ;;  %v6624_v37 = vld [vmem:[#allocation36_spill] sm:$0xff] }
 0x107   : > { %v916_v52 = vpop.f32.mrf.mxu1 }
 0x108   : > { %v5731_v31 = vadd.f32 %v4162_v58, %v922_v60  ;;  %v917_v28 = vadd.f32 %v916_v52, %v5593_v1  ;;  %v4165_v3 = vpop.f32.mrf.mxu0  ;;  %4464 = vmatmul.mubr.msk.f32.gmra.mxu0 %vm469_vm3, %v6599_v32  ;;  %v6625_v52 = vld [vmem:[#allocation38_spill] sm:$0xff] }
 0x109   : > { %v4115_v15 = vpop.f32.mrf.mxu1  ;;  %4414 = vmatmul.mubr.msk.f32.gmra.mxu1 %vm469_vm3, %v6621_v8  ;;  %4466 = vmatprep.mubr.msk.f32.mxu0 %vm469_vm3, %v5145_v11 }
 0x10a   : > { %v5740_v18 = vadd.f32 %v1291_v38, %v917_v28  ;;  %v932_v0 = vadd.f32 %v4115_v15, %v5599_v55  ;;  %v1301_v17 = vpop.f32.mrf.mxu0  ;;  %4416 = vmatprep.mubr.msk.f32.mxu1 %vm469_vm3, %v6622_v12 }
 0x10b   : > { %v926_v1 = vpop.f32.mrf.mxu1 }
 0x10c   : > { %v5745_v19 = vadd.f32 %v4165_v3, %v932_v0  ;;  %v927_v32 = vadd.f32 %v926_v1, %v5609_v25  ;;  %v4168_v35 = vpop.f32.mrf.mxu0  ;;  %4467 = vmatmul.mubr.msk.f32.gmra.mxu0 %vm469_vm3, %v6600_v41  ;;  %v6626_v3 = vld [vmem:[#allocation8_spill] sm:$0xff]  ;;  %v6628_v1 = vld [vmem:[#allocation11_spill] sm:$0xff] }
 0x10d   : > { %v4118_v6 = vpop.f32.mrf.mxu1  ;;  %4417 = vmatmul.mubr.msk.f32.gmra.mxu1 %vm469_vm3, %v6623_v54  ;;  %4469 = vmatprep.mubr.msk.f32.mxu0 %vm469_vm3, %v5162_v30  ;;  %v6629_v54 = vld [vmem:[#allocation13_spill] sm:$0xff] }
 0x10e   : > { %v5754_v11 = vadd.f32 %v1301_v17, %v927_v32  ;;  %v942_v55 = vadd.f32 %v4118_v6, %v5615_v2  ;;  %v1311_v58 = vpop.f32.mrf.mxu0  ;;  %4419 = vmatprep.mubr.msk.f32.mxu1 %vm469_vm3, %v6624_v37  ;;  %v6627_v17 = vld [vmem:[#allocation9_spill] sm:$0xff] }
 0x10f   : > { %v936_v25 = vpop.f32.mrf.mxu1 }
 0x110   : > { %v5759_v60 = vadd.f32 %v4168_v35, %v942_v55  ;;  %v937_v41 = vadd.f32 %v936_v25, %v5625_v10  ;;  %v4171_v38 = vpop.f32.mrf.mxu0  ;;  %4470 = vmatmul.mubr.msk.f32.gmra.mxu0 %vm469_vm3, %v6601_v47 }
 0x111   : > { %v4121_v5 = vpop.f32.mrf.mxu1  ;;  %4420 = vmatmul.mubr.msk.f32.gmra.mxu1 %vm469_vm3, %v6625_v52  ;;  %4472 = vmatprep.mubr.msk.f32.mxu0 %vm469_vm3, %v5179_v36  ;;  %v6632_v52 = vld [vmem:[#allocation19_spill] sm:$0xff] }
 0x112   : > { %v5768_v30 = vadd.f32 %v1311_v58, %v937_v41  ;;  %v952_v2 = vadd.f32 %v4121_v5, %v5633_v63  ;;  %v1321_v28 = vpop.f32.mrf.mxu0  ;;  %4422 = vmatprep.mubr.msk.f32.mxu1 %vm469_vm3, %v6626_v3  ;;  %v6630_v58 = vld [vmem:[#allocation15_spill] sm:$0xff] }
 0x113   : > { %v946_v10 = vpop.f32.mrf.mxu1 }
 0x114   : > { %v5773_v15 = vadd.f32 %v4171_v38, %v952_v2  ;;  %v947_v47 = vadd.f32 %v946_v10, %v5643_v57  ;;  %v4174_v8 = vpop.f32.mrf.mxu0  ;;  %4473 = vmatmul.mubr.msk.f32.gmra.mxu0 %vm469_vm3, %v6602_v59  ;;  %v6631_v38 = vld [vmem:[#allocation17_spill] sm:$0xff] }
 0x115   : > { %v4124_v0 = vpop.f32.mrf.mxu1  ;;  %4423 = vmatmul.mubr.msk.f32.gmra.mxu1 %vm469_vm3, %v6627_v17  ;;  %4475 = vmatprep.mubr.msk.f32.mxu0 %vm469_vm3, %v5196_v27  ;;  %v6633_v10 = vld [vmem:[#allocation21_spill] sm:$0xff] }
 0x116   : > { %v5782_v63 = vadd.f32 %v1321_v28, %v947_v47  ;;  %v962_v36 = vadd.f32 %v4124_v0, %v5656_v16  ;;  %v1331_v12 = vpop.f32.mrf.mxu0  ;;  %4425 = vmatprep.mubr.msk.f32.mxu1 %vm469_vm3, %v6628_v1 }
 0x117   : > { %v956_v57 = vpop.f32.mrf.mxu1 }
 0x118   : > { %v5787_v32 = vadd.f32 %v4174_v8, %v962_v36  ;;  %v957_v59 = vadd.f32 %v956_v57, %v5669_v56  ;;  %v4177_v35 = vpop.f32.mrf.mxu0  ;;  %4476 = vmatmul.mubr.msk.f32.gmra.mxu0 %vm469_vm3, %v6603_v21  ;;  %v6634_v8 = vld [vmem:[#allocation23_spill] sm:$0xff]  ;;  %v6636_v57 = vld [vmem:[#allocation29_spill] sm:$0xff] }
 0x119   : > { %v4127_v6 = vpop.f32.mrf.mxu1  ;;  %4426 = vmatmul.mubr.msk.f32.gmra.mxu1 %vm469_vm3, %v6629_v54  ;;  %4478 = vmatprep.mubr.msk.f32.mxu0 %vm469_vm3, %v5213_v45  ;;  %v6637_v54 = vld [vmem:[#allocation31_spill] sm:$0xff] }
 0x11a   : > { %v5796_v27 = vadd.f32 %v1331_v12, %v957_v59  ;;  %v972_v16 = vadd.f32 %v4127_v6, %v5678_v50  ;;  %v1341_v55 = vpop.f32.mrf.mxu0  ;;  %4428 = vmatprep.mubr.msk.f32.mxu1 %vm469_vm3, %v6630_v58  ;;  %v6635_v12 = vld [vmem:[#allocation26_spill] sm:$0xff] }
 0x11b   : > { %v966_v56 = vpop.f32.mrf.mxu1 }
 0x11c   : > { %v5801_v37 = vadd.f32 %v4177_v35, %v972_v16  ;;  %v967_v21 = vadd.f32 %v966_v56, %v5688_v13  ;;  %v4180_v25 = vpop.f32.mrf.mxu0  ;;  %4479 = vmatmul.mubr.msk.f32.gmra.mxu0 %vm469_vm3, %v6604_v14 }
 0x11d   : > { %v4130_v41 = vpop.f32.mrf.mxu1  ;;  %4429 = vmatmul.mubr.msk.f32.gmra.mxu1 %vm469_vm3, %v6631_v38  ;;  %4481 = vmatprep.mubr.msk.f32.mxu0 %vm469_vm3, %v6605_v24  ;;  %v6640_v38 = vld [vmem:[#allocation12_spill] sm:$0xff] }
 0x11e   : > { %v5810_v45 = vadd.f32 %v1341_v55, %v967_v21  ;;  %v982_v50 = vadd.f32 %v4130_v41, %v5555_v7  ;;  %v1351_v5 = vpop.f32.mrf.mxu0  ;;  %4431 = vmatprep.mubr.msk.f32.mxu1 %vm469_vm3, %v6632_v52  ;;  %v6638_v55 = vld [vmem:[#allocation33_spill] sm:$0xff]  ;;  %v2542_v52 = vrot.slane %v5648_v33, 1 }
 0x11f   : > { %v976_v13 = vpop.f32.mrf.mxu1 }
 0x120   : > { %v5815_v2 = vadd.f32 %v4180_v25, %v982_v50  ;;  %v977_v14 = vadd.f32 %v976_v13, %v5565_v34  ;;  %v4183_v28 = vpop.f32.mrf.mxu0  ;;  %4482 = vmatmul.mubr.msk.f32.gmra.mxu0 %vm469_vm3, %v6606_v9  ;;  %v2814_v25 = vrot.slane %v5667_v26, 2  ;;  %v2543_v13 = vrot.slane %v5667_v26, 1  ;;  %v6646_v26 = vld [vmem:[#allocation16_spill] sm:$0xff] }
 0x121   : > { %v4133_v3 = vpop.f32.mrf.mxu1  ;;  %4432 = vmatmul.mubr.msk.f32.gmra.mxu1 %vm469_vm3, %v6633_v10  ;;  %4484 = vmatprep.mubr.msk.f32.mxu0 %vm469_vm3, %v6607_v44 }
 0x122   : > { %v5824_v7 = vadd.f32 %v1351_v5, %v977_v14  ;;  %v992_v24 = vadd.f32 %v4133_v3, %v5571_v39  ;;  %v1361_v47 = vpop.f32.mrf.mxu0  ;;  %4434 = vmatprep.mubr.msk.f32.mxu1 %vm469_vm3, %v6634_v8  ;;  %v6641_v5 = vld [vmem:[#allocation37_spill] sm:$0xff]  ;;  %v6644_v8 = vld [vmem:[#allocation39_spill] sm:$0xff] }
 0x123   : > { %v986_v34 = vpop.f32.mrf.mxu1 }
 0x124   : > { %v5829_v0 = vadd.f32 %v4183_v28, %v992_v24  ;;  %v987_v9 = vadd.f32 %v986_v34, %v5581_v43  ;;  %v4186_v17 = vpop.f32.mrf.mxu0  ;;  %4485 = vmatmul.mubr.msk.f32.gmra.mxu0 %vm469_vm3, %v6608_v20  ;;  %v6643_v24 = vld [vmem:[#allocation24_spill] sm:$0xff] }
 0x125   : > { %v4136_v36 = vpop.f32.mrf.mxu1  ;;  %4435 = vmatmul.mubr.msk.f32.gmra.mxu1 %vm469_vm3, %v6635_v12  ;;  %4487 = vmatprep.mubr.msk.f32.mxu0 %vm469_vm3, %v5264_v48  ;;  %v6645_v34 = vld [vmem:[#allocation20_spill] sm:$0xff] }
 0x126   : > { %v5838_v39 = vadd.f32 %v1361_v47, %v987_v9  ;;  %v1002_v44 = vadd.f32 %v4136_v36, %v5587_v53  ;;  %v1371_v1 = vpop.f32.mrf.mxu0  ;;  %4437 = vmatprep.mubr.msk.f32.mxu1 %vm469_vm3, %v6636_v57  ;;  %v6647_v12 = vld [vmem:[#allocation28_spill] sm:$0xff] }
 0x127   : > { %v996_v43 = vpop.f32.mrf.mxu1 }
 0x128   : > { %v5843_v59 = vadd.f32 %v4186_v17, %v1002_v44  ;;  %v997_v20 = vadd.f32 %v996_v43, %v5597_v62  ;;  %v4189_v35 = vpop.f32.mrf.mxu0  ;;  %4488 = vmatmul.mubr.msk.f32.gmra.mxu0 %vm469_vm3, %v5275_v51  ;;  %v2544_v43 = vsel %vm386_vm2, %v2542_v52, %v2543_v13 }
 0x129   : > { %v4139_v6 = vpop.f32.mrf.mxu1  ;;  %4438 = vmatmul.mubr.msk.f32.gmra.mxu1 %vm469_vm3, %v6637_v54  ;;  %4490 = vmatprep.mubr.msk.f32.mxu0 %vm469_vm3, %v5281_v42  ;;  %v6639_v42 = vld [vmem:[#allocation35_spill] sm:$0xff] }
 0x12a   : > { %v5852_v48 = vadd.f32 %v1371_v1, %v997_v20  ;;  %v1012_v53 = vadd.f32 %v4139_v6, %v5603_v4  ;;  %v1381_v16 = vpop.f32.mrf.mxu0  ;;  %4440 = vmatprep.mubr.msk.f32.mxu1 %vm469_vm3, %v6638_v55  ;;  %v2813_v4 = vrot.slane %v5648_v33, 2  ;;  %v6650_v55 = vld [vmem:[#allocation10_spill] sm:$0xff] }
 0x12b   : > { %v1006_v62 = vpop.f32.mrf.mxu1 }
 0x12c   : > { %v5857_v58 = vadd.f32 %v4189_v35, %v1012_v53  ;;  %v1007_v51 = vadd.f32 %v1006_v62, %v5613_v61  ;;  %v4192_v56 = vpop.f32.mrf.mxu0  ;;  %4491 = vmatmul.mubr.msk.f32.gmra.mxu0 %vm469_vm3, %v5292_v46  ;;  %v336_v46 = vld [vmem:[%s4655_s9 + $0x1a8] sm:$0x3]  ;;  %v2815_v44 = vsel %vm1055_vm4, %v2813_v4, %v2814_v25  ;;  %v6648_v35 = vld [vmem:[#allocation18_spill] sm:$0xff]  ;;  %s4594_s9 = smov [#allocation4]  }
 0x12d   : > { %v4142_v21 = vpop.f32.mrf.mxu1  ;;  %4441 = vmatmul.mubr.msk.f32.gmra.mxu1 %vm469_vm3, %v6639_v42  ;;  %4493 = vmatprep.mubr.msk.f32.mxu0 %vm469_vm3, %v5298_v40  ;;  %v6642_v40 = vld [vmem:[#allocation14_spill] sm:$0xff]  ;;  %v2816_v9 = vrot.slane %v336_v46, 2  ;;  %v2545_v1 = vrot.slane %v336_v46, 1  ;;  %v6649_v53 = vld [vmem:[#allocation40_spill] sm:$0xff]  ;;  %s3358_s10 = sshll.u32 %s4594_s9, 4  ;;  %s3359_s10 = int_to_ptr.vmem [resolvable:$true] %s3358_s10 }
 0x12e   : > { %v5868_v41 = vadd.f32 %v1381_v16, %v1007_v51  ;;  %v1022_v50 = vadd.f32 %v4142_v21, %v6640_v38  ;;  %v1391_v61 = vpop.f32.mrf.mxu0  ;;  %4443 = vmatprep.mubr.msk.f32.mxu1 %vm469_vm3, %v6641_v5 }
 0x12f   : > { %v1016_v14 = vpop.f32.mrf.mxu1  ;;  %v2817_v62 = vsel %vm1055_vm4, %v2814_v25, %v2816_v9  ;;  %v2546_v4 = vsel %vm386_vm2, %v2543_v13, %v2545_v1  ;;  %v6654_v13 = vld [vmem:[#allocation43_spill] sm:$0xff] }
 0x130   : > { %v5876_v28 = vadd.f32 %v4192_v56, %v1022_v50  ;;  %v1017_v3 = vadd.f32 %v1016_v14, %v6642_v40  ;;  %v4195_v10 = vpop.f32.mrf.mxu0  ;;  %4494 = vmatmul.mubr.msk.f32.gmra.mxu0 %vm469_vm3, %v6643_v24  ;;  %v6651_v56 = vld [vmem:[#allocation25_spill] sm:$0xff]  ;;  %v6653_v14 = vld [vmem:[#allocation42_spill] sm:$0xff] }
 0x131   : > { %v4145_v47 = vpop.f32.mrf.mxu1  ;;  %4444 = vmatmul.mubr.msk.f32.gmra.mxu1 %vm469_vm3, %v6644_v8  ;;  %4496 = vmatprep.mubr.msk.f32.mxu0 %vm469_vm3, %v6645_v34 }
 0x132   : > { %v5885_v33 = vadd.f32 %v1391_v61, %v1017_v3  ;;  %v1032_v17 = vadd.f32 %v4145_v47, %v6646_v26  ;;  %v1401_v36 = vpop.f32.mrf.mxu0  ;;  %4446 = vmatprep.mubr.msk.f32.mxu1 %vm469_vm3, %v6647_v12  ;;  %v6652_v61 = vld [vmem:[#allocation41_spill] sm:$0xff] }
 0x133   : > { %v1026_v57 = vpop.f32.mrf.mxu1 }
 0x134   : > { %v5892_v20 = vadd.f32 %v4195_v10, %v1032_v17  ;;  %v1027_v6 = vadd.f32 %v1026_v57, %v6648_v35  ;;  %v4198_v54 = vpop.f32.mrf.mxu0  ;;  %4497 = vmatmul.mubr.msk.f32.gmra.mxu0 %vm469_vm3, %v6649_v53 }
 0x135   : > { %v4148_v16 = vpop.f32.mrf.mxu1  ;;  %4447 = vmatmul.mubr.msk.f32.gmra.mxu1 %vm469_vm3, %v6650_v55  ;;  %4499 = vmatprep.mubr.msk.f32.mxu0 %vm469_vm3, %v2815_v44 }
 0x136   : > { %v5901_v51 = vadd.f32 %v1401_v36, %v1027_v6  ;;  %v1042_v21 = vadd.f32 %v4148_v16, %v6651_v56  ;;  %v1411_v42 = vpop.f32.mrf.mxu0  ;;  %4449 = vmatprep.mubr.msk.f32.mxu1 %vm469_vm3, %v2544_v43 }
 0x137   : > { %v1036_v38 = vpop.f32.mrf.mxu1 }
 0x138   : > { %v5906_v50 = vadd.f32 %v4198_v54, %v1042_v21  ;;  %v1037_v5 = vadd.f32 %v1036_v38, %v6652_v61  ;;  %v4201_v46 = vpop.f32.mrf.mxu0  ;;  %4500 = vmatmul.mubr.msk.f32.gmra.mxu0 %vm469_vm3, %v2817_v62 }
 0x139   : > { %v4151_v52 = vpop.f32.mrf.mxu1  ;;  %4450 = vmatmul.mubr.msk.f32.gmra.mxu1 %vm469_vm3, %v2546_v4 }
 0x13a   : > { %v5911_v25 = vadd.f32 %v1411_v42, %v1037_v5  ;;  %v1052_v40 = vadd.f32 %v4151_v52, %v6653_v14  ;;  %v1421_v3 = vpop.f32.mrf.mxu0 }
 0x13b   : > { %v1046_v10 = vpop.f32.mrf.mxu1 }
 0x13c   : > { %v5914_v24 = vadd.f32 %v4201_v46, %v1052_v40  ;;  %v1047_v47 = vadd.f32 %v1046_v10, %v6654_v13  ;;  %v4256_v8 = vpop.f32.mrf.mxu0 }
 0x13d   : > { %v4206_v34 = vpop.f32.mrf.mxu1 }
 0x13e   : > { %v5917_v9 = vadd.f32 %v1421_v3, %v1047_v47  ;;  %v1699_v26 = vadd.f32 %v4206_v34, %v5703_v23  ;;  %v1811_v17 = vpop.f32.mrf.mxu0 }
 0x13f   : > { %v1539_v36 = vpop.f32.mrf.mxu1 }
 0x140   : > { %v5920_v12 = vadd.f32 %v4256_v8, %v1699_v26  ;;  %v1698_v44 = vadd.f32 %v1539_v36, %v5712_v49  ;;  %v4259_v1 = vpop.f32.mrf.mxu0 }
 0x141   : > { %v4209_v57 = vpop.f32.mrf.mxu1 }
 0x142   : > { %v5923_v43 = vadd.f32 %v1811_v17, %v1698_v44  ;;  %v1701_v35 = vadd.f32 %v4209_v57, %v5717_v22  ;;  %v1821_v6 = vpop.f32.mrf.mxu0 }
 0x143   : > { %v1549_v54 = vpop.f32.mrf.mxu1 }
 0x144   : > { %v5926_v53 = vadd.f32 %v4259_v1, %v1701_v35  ;;  %v1700_v16 = vadd.f32 %v1549_v54, %v5726_v29  ;;  %v4262_v55 = vpop.f32.mrf.mxu0 }
 0x145   : > { %v4212_v23 = vpop.f32.mrf.mxu1 }
 0x146   : > { %v5929_v62 = vadd.f32 %v1821_v6, %v1700_v16  ;;  %v1703_v56 = vadd.f32 %v4212_v23, %v5731_v31  ;;  %v1831_v21 = vpop.f32.mrf.mxu0 }
 0x147   : > { %v1559_v49 = vpop.f32.mrf.mxu1 }
 0x148   : > { %v5932_v42 = vadd.f32 %v4262_v55, %v1703_v56  ;;  %v1702_v4 = vadd.f32 %v1559_v49, %v5740_v18  ;;  %v4265_v38 = vpop.f32.mrf.mxu0 }
 0x149   : > { %v4215_v22 = vpop.f32.mrf.mxu1 }
 0x14a   : > { %v5935_v61 = vadd.f32 %v1831_v21, %v1702_v4  ;;  %v1705_v5 = vadd.f32 %v4215_v22, %v5745_v19  ;;  %v1841_v46 = vpop.f32.mrf.mxu0 }
 0x14b   : > { %v1569_v29 = vpop.f32.mrf.mxu1 }
 0x14c   : > { %v5938_v52 = vadd.f32 %v4265_v38, %v1705_v5  ;;  %v1704_v14 = vadd.f32 %v1569_v29, %v5754_v11  ;;  %v4268_v40 = vpop.f32.mrf.mxu0 }
 0x14d   : > { %v4218_v31 = vpop.f32.mrf.mxu1 }
 0x14e   : > { %v5941_v3 = vadd.f32 %v1841_v46, %v1704_v14  ;;  %v1707_v10 = vadd.f32 %v4218_v31, %v5759_v60  ;;  %v1851_v13 = vpop.f32.mrf.mxu0 }
 0x14f   : > { %v1579_v18 = vpop.f32.mrf.mxu1 }
 0x150   : > { %v5944_v47 = vadd.f32 %v4268_v40, %v1707_v10  ;;  %v1706_v8 = vadd.f32 %v1579_v18, %v5768_v30  ;;  %v4271_v34 = vpop.f32.mrf.mxu0 }
 0x151   : > { %v4221_v19 = vpop.f32.mrf.mxu1 }
 0x152   : > { %v5947_v26 = vadd.f32 %v1851_v13, %v1706_v8  ;;  %v1709_v17 = vadd.f32 %v4221_v19, %v5773_v15  ;;  %v1861_v36 = vpop.f32.mrf.mxu0 }
 0x153   : > { %v1589_v11 = vpop.f32.mrf.mxu1 }
 0x154   : > { %v5950_v44 = vadd.f32 %v4271_v34, %v1709_v17  ;;  %v1708_v1 = vadd.f32 %v1589_v11, %v5782_v63  ;;  %v4274_v57 = vpop.f32.mrf.mxu0 }
 0x155   : > { %v4224_v60 = vpop.f32.mrf.mxu1 }
 0x156   : > { %v5953_v35 = vadd.f32 %v1861_v36, %v1708_v1  ;;  %v1711_v6 = vadd.f32 %v4224_v60, %v5787_v32  ;;  %v1871_v54 = vpop.f32.mrf.mxu0 }
 0x157   : > { %v1599_v30 = vpop.f32.mrf.mxu1 }
 0x158   : > { %v5956_v16 = vadd.f32 %v4274_v57, %v1711_v6  ;;  %v1710_v55 = vadd.f32 %v1599_v30, %v5796_v27  ;;  %v4277_v23 = vpop.f32.mrf.mxu0 }
 0x159   : > { %v4227_v15 = vpop.f32.mrf.mxu1 }
 0x15a   : > { %v5959_v56 = vadd.f32 %v1871_v54, %v1710_v55  ;;  %v1713_v21 = vadd.f32 %v4227_v15, %v5801_v37  ;;  %v1881_v49 = vpop.f32.mrf.mxu0 }
 0x15b   : > { %v1609_v63 = vpop.f32.mrf.mxu1 }
 0x15c   : > { %v5962_v4 = vadd.f32 %v4277_v23, %v1713_v21  ;;  %v1712_v38 = vadd.f32 %v1609_v63, %v5810_v45  ;;  %v4280_v22 = vpop.f32.mrf.mxu0 }
 0x15d   : > { %v4230_v32 = vpop.f32.mrf.mxu1 }
 0x15e   : > { %v5965_v5 = vadd.f32 %v1881_v49, %v1712_v38  ;;  %v1715_v46 = vadd.f32 %v4230_v32, %v5815_v2  ;;  %v1891_v29 = vpop.f32.mrf.mxu0 }
 0x15f   : > { %v1619_v27 = vpop.f32.mrf.mxu1 }
 0x160   : > { %v5968_v14 = vadd.f32 %v4280_v22, %v1715_v46  ;;  %v1714_v40 = vadd.f32 %v1619_v27, %v5824_v7  ;;  %v4283_v31 = vpop.f32.mrf.mxu0 }
 0x161   : > { %v4233_v37 = vpop.f32.mrf.mxu1 }
 0x162   : > { %6655 = vst [vmem:[#allocation44_spill] sm:$0xff] %v5968_v14  ;;  %v5971_v10 = vadd.f32 %v1891_v29, %v1714_v40  ;;  %v1717_v13 = vadd.f32 %v4233_v37, %v5829_v0  ;;  %v1901_v18 = vpop.f32.mrf.mxu0 }
 0x163   : > { %v1629_v45 = vpop.f32.mrf.mxu1 }
 0x164   : > { %6656 = vst [vmem:[#allocation45_spill] sm:$0xff] %v5971_v10  ;;  %v5974_v8 = vadd.f32 %v4283_v31, %v1717_v13  ;;  %v1716_v34 = vadd.f32 %v1629_v45, %v5838_v39  ;;  %v4286_v19 = vpop.f32.mrf.mxu0 }
 0x165   : > { %v4236_v2 = vpop.f32.mrf.mxu1 }
 0x166   : > { %6657 = vst [vmem:[#allocation46_spill] sm:$0xff] %v5974_v8  ;;  %v5977_v17 = vadd.f32 %v1901_v18, %v1716_v34  ;;  %v1719_v36 = vadd.f32 %v4236_v2, %v5843_v59  ;;  %v1911_v11 = vpop.f32.mrf.mxu0 }
 0x167   : > { %v1639_v7 = vpop.f32.mrf.mxu1 }
 0x168   : > { %6658 = vst [vmem:[#allocation47_spill] sm:$0xff] %v5977_v17  ;;  %v5980_v1 = vadd.f32 %v4286_v19, %v1719_v36  ;;  %v1718_v57 = vadd.f32 %v1639_v7, %v5852_v48  ;;  %v4289_v60 = vpop.f32.mrf.mxu0 }
 0x169   : > { %v4239_v0 = vpop.f32.mrf.mxu1 }
 0x16a   : > { %6659 = vst [vmem:[#allocation48_spill] sm:$0xff] %v5980_v1  ;;  %v5983_v6 = vadd.f32 %v1911_v11, %v1718_v57  ;;  %v1721_v54 = vadd.f32 %v4239_v0, %v5857_v58  ;;  %v1921_v30 = vpop.f32.mrf.mxu0 }
 0x16b   : > { %v1649_v39 = vpop.f32.mrf.mxu1 }
 0x16c   : > { %6660 = vst [vmem:[#allocation49_spill] sm:$0xff] %v5983_v6  ;;  %v5986_v55 = vadd.f32 %v4289_v60, %v1721_v54  ;;  %v1720_v23 = vadd.f32 %v1649_v39, %v5868_v41  ;;  %v4292_v15 = vpop.f32.mrf.mxu0 }
 0x16d   : > { %v4242_v59 = vpop.f32.mrf.mxu1 }
 0x16e   : > { %6661 = vst [vmem:[#allocation50_spill] sm:$0xff] %v5986_v55  ;;  %v5989_v21 = vadd.f32 %v1921_v30, %v1720_v23  ;;  %v1723_v49 = vadd.f32 %v4242_v59, %v5876_v28  ;;  %v1931_v63 = vpop.f32.mrf.mxu0 }
 0x16f   : > { %v1659_v48 = vpop.f32.mrf.mxu1 }
 0x170   : > { %6662 = vst [vmem:[#allocation22_spill] sm:$0xff] %v5989_v21  ;;  %v5992_v38 = vadd.f32 %v4292_v15, %v1723_v49  ;;  %v1722_v22 = vadd.f32 %v1659_v48, %v5885_v33  ;;  %v4295_v32 = vpop.f32.mrf.mxu0 }
 0x171   : > { %v4245_v58 = vpop.f32.mrf.mxu1 }
 0x172   : > { %6663 = vst [vmem:[#allocation27_spill] sm:$0xff] %v5992_v38  ;;  %v5995_v46 = vadd.f32 %v1931_v63, %v1722_v22  ;;  %v1725_v29 = vadd.f32 %v4245_v58, %v5892_v20  ;;  %v1941_v27 = vpop.f32.mrf.mxu0 }
 0x173   : > { %v1669_v41 = vpop.f32.mrf.mxu1 }
 0x174   : > { %6664 = vst [vmem:[#allocation30_spill] sm:$0xff] %v5995_v46  ;;  %v5998_v40 = vadd.f32 %v4295_v32, %v1725_v29  ;;  %v1724_v31 = vadd.f32 %v1669_v41, %v5901_v51  ;;  %v4298_v37 = vpop.f32.mrf.mxu0 }
 0x175   : > { %v4248_v28 = vpop.f32.mrf.mxu1 }
 0x176   : > { %6665 = vst [vmem:[#allocation32_spill] sm:$0xff] %v5998_v40  ;;  %v6001_v13 = vadd.f32 %v1941_v27, %v1724_v31  ;;  %v1727_v18 = vadd.f32 %v4248_v28, %v5906_v50  ;;  %v1951_v45 = vpop.f32.mrf.mxu0 }
 0x177   : > { %v1679_v33 = vpop.f32.mrf.mxu1 }
 0x178   : > { %6666 = vst [vmem:[#allocation34_spill] sm:$0xff] %v6001_v13  ;;  %v6004_v34 = vadd.f32 %v4298_v37, %v1727_v18  ;;  %v1726_v19 = vadd.f32 %v1679_v33, %v5911_v25  ;;  %v4301_v2 = vpop.f32.mrf.mxu0 }
 0x179   : > { %v4251_v20 = vpop.f32.mrf.mxu1 }
 0x17a   : > { %6667 = vst [vmem:[#allocation36_spill] sm:$0xff] %v6004_v34  ;;  %v6007_v36 = vadd.f32 %v1951_v45, %v1726_v19  ;;  %v1729_v11 = vadd.f32 %v4251_v20, %v5914_v24  ;;  %v1961_v7 = vpop.f32.mrf.mxu0 }
 0x17b   : > { %v1689_v51 = vpop.f32.mrf.mxu1 }
 0x17c   : > { %6668 = vst [vmem:[#allocation38_spill] sm:$0xff] %v6007_v36  ;;  %v6010_v57 = vadd.f32 %v4301_v2, %v1729_v11  ;;  %v1728_v60 = vadd.f32 %v1689_v51, %v5917_v9  ;;  %v6013_v0 = vpop.f32.mrf.mxu0 }
 0x17d   : > { %v4306_v50 = vpop.f32.mrf.mxu1 }
 0x17e   : > { %6669 = vst [vmem:[#allocation8_spill] sm:$0xff] %v6010_v57  ;;  %v6015_v54 = vadd.f32 %v1961_v7, %v1728_v60  ;;  %v6017_v30 = vpop.f32.mrf.mxu0 }
 0x17f   : > { %v2082_v25 = vpop.f32.mrf.mxu1 }
 0x180   : > { %6670 = vst [vmem:[#allocation9_spill] sm:$0xff] %v6015_v54  ;;  %v6019_v39 = vpop.f32.mrf.mxu0 }
 0x181   : > { %v4309_v23 = vpop.f32.mrf.mxu1 }
 0x182   : > { %v6021_v15 = vpop.f32.mrf.mxu0 }
 0x183   : > { %v2092_v24 = vpop.f32.mrf.mxu1 }
 0x184   : > { %v6023_v59 = vpop.f32.mrf.mxu0 }
 0x185   : > { %v4312_v49 = vpop.f32.mrf.mxu1 }
 0x186   : > { %v6025_v63 = vpop.f32.mrf.mxu0 }
 0x187   : > { %v2102_v9 = vpop.f32.mrf.mxu1 }
 0x188   : > { %v6027_v48 = vpop.f32.mrf.mxu0 }
 0x189   : > { %v4315_v22 = vpop.f32.mrf.mxu1 }
 0x18a   : > { %v6029_v32 = vpop.f32.mrf.mxu0 }
 0x18b   : > { %v2112_v58 = vpop.f32.mrf.mxu1 }
 0x18c   : > { %v6031_v29 = vpop.f32.mrf.mxu0 }
 0x18d   : > { %v4318_v27 = vpop.f32.mrf.mxu1 }
 0x18e   : > { %v6033_v41 = vpop.f32.mrf.mxu0 }
 0x18f   : > { %v2122_v31 = vpop.f32.mrf.mxu1 }
 0x190   : > { %v6035_v37 = vpop.f32.mrf.mxu0 }
 0x191   : > { %v4321_v28 = vpop.f32.mrf.mxu1 }
 0x192   : > { %v6037_v18 = vpop.f32.mrf.mxu0 }
 0x193   : > { %6671 = vst [vmem:[#allocation11_spill] sm:$0xff] %v6037_v18  ;;  %v2132_v45 = vpop.f32.mrf.mxu1 }
 0x194   : > { %v6039_v33 = vpop.f32.mrf.mxu0 }
 0x195   : > { %6672 = vst [vmem:[#allocation13_spill] sm:$0xff] %v6039_v33  ;;  %v4324_v19 = vpop.f32.mrf.mxu1 }
 0x196   : > { %v6041_v2 = vpop.f32.mrf.mxu0 }
 0x197   : > { %6673 = vst [vmem:[#allocation15_spill] sm:$0xff] %v6041_v2  ;;  %v2142_v20 = vpop.f32.mrf.mxu1 }
 0x198   : > { %v6043_v11 = vpop.f32.mrf.mxu0 }
 0x199   : > { %6674 = vst [vmem:[#allocation17_spill] sm:$0xff] %v6043_v11  ;;  %v4327_v7 = vpop.f32.mrf.mxu1 }
 0x19a   : > { %v6045_v51 = vpop.f32.mrf.mxu0 }
 0x19b   : > { %6675 = vst [vmem:[#allocation19_spill] sm:$0xff] %v6045_v51  ;;  %v2152_v60 = vpop.f32.mrf.mxu1 }
 0x19c   : > { %v6047_v54 = vpop.f32.mrf.mxu0 }
 0x19d   : > { %6676 = vst [vmem:[#allocation21_spill] sm:$0xff] %v6047_v54  ;;  %v4330_v57 = vpop.f32.mrf.mxu1 }
 0x19e   : > { %v6049_v36 = vpop.f32.mrf.mxu0 }
 0x19f   : > { %6677 = vst [vmem:[#allocation23_spill] sm:$0xff] %v6049_v36  ;;  %v2162_v34 = vpop.f32.mrf.mxu1 }
 0x1a0   : > { %v6051_v13 = vpop.f32.mrf.mxu0 }
 0x1a1   : > { %6678 = vst [vmem:[#allocation26_spill] sm:$0xff] %v6051_v13  ;;  %v4333_v40 = vpop.f32.mrf.mxu1 }
 0x1a2   : > { %v6053_v46 = vpop.f32.mrf.mxu0 }
 0x1a3   : > { %6679 = vst [vmem:[#allocation29_spill] sm:$0xff] %v6053_v46  ;;  %v2172_v38 = vpop.f32.mrf.mxu1 }
 0x1a4   : > { %v6055_v21 = vpop.f32.mrf.mxu0 }
 0x1a5   : > { %6680 = vst [vmem:[#allocation31_spill] sm:$0xff] %v6055_v21  ;;  %v4336_v55 = vpop.f32.mrf.mxu1 }
 0x1a6   : > { %v6057_v11 = vpop.f32.mrf.mxu0 }
 0x1a7   : > { %6681 = vst [vmem:[#allocation33_spill] sm:$0xff] %v6057_v11  ;;  %v2182_v6 = vpop.f32.mrf.mxu1  ;;  %v2242_v11 = vadd.f32 %v4306_v50, %v5920_v12  ;;  %v2247_v12 = vadd.f32 %v2112_v58, %v5941_v3  ;;  %v2254_v3 = vadd.f32 %v4324_v19, %v5956_v16  ;;  %v2256_v16 = vadd.f32 %v4327_v7, %v5962_v4  ;;  %v6690_v4 = vld [vmem:[#allocation13_spill] sm:$0xff]  ;;  %v6698_v7 = vld [vmem:[#allocation19_spill] sm:$0xff] }
 0x1a8   : > { %v6059_v51 = vpop.f32.mrf.mxu0 }
 0x1a9   : > { %6682 = vst [vmem:[#allocation35_spill] sm:$0xff] %v6059_v51  ;;  %v4339_v1 = vpop.f32.mrf.mxu1  ;;  %v2241_v51 = vadd.f32 %v2082_v25, %v5923_v43  ;;  %v2510_v43 = vadd.f32 %v6013_v0, %v2242_v11  ;;  %v2249_v25 = vadd.f32 %v2122_v31, %v5947_v26 }
 0x1aa   : > { %v6061_v54 = vpop.f32.mrf.mxu0 }
 0x1ab   : > { %6683 = vst [vmem:[#allocation12_spill] sm:$0xff] %v6061_v54  ;;  %v2192_v17 = vpop.f32.mrf.mxu1  ;;  %v2244_v54 = vadd.f32 %v4309_v23, %v5926_v53  ;;  %v2250_v53 = vadd.f32 %v4318_v27, %v5944_v47 }
 0x1ac   : > { %v6063_v36 = vpop.f32.mrf.mxu0 }
 0x1ad   : > { %6684 = vst [vmem:[#allocation37_spill] sm:$0xff] %v6063_v36  ;;  %v4342_v2 = vpop.f32.mrf.mxu1  ;;  %v2243_v36 = vadd.f32 %v2092_v24, %v5929_v62  ;;  %v2252_v62 = vadd.f32 %v4321_v28, %v5950_v44  ;;  %v2253_v44 = vadd.f32 %v2142_v20, %v5959_v56  ;;  %v6696_v28 = vld [vmem:[#allocation49_spill] sm:$0xff] }
 0x1ae   : > { %v6065_v13 = vpop.f32.mrf.mxu0  ;;  %v6697_v20 = vld [vmem:[#allocation17_spill] sm:$0xff] }
 0x1af   : > { %6685 = vst [vmem:[#allocation14_spill] sm:$0xff] %v6065_v13  ;;  %v2202_v8 = vpop.f32.mrf.mxu1  ;;  %v2246_v13 = vadd.f32 %v4312_v49, %v5932_v42  ;;  %v2509_v42 = vadd.f32 %v6017_v30, %v2241_v51  ;;  %v6102_v0 = vadd.f32 %v6021_v15, %v2243_v36  ;;  %v2255_v36 = vadd.f32 %v2152_v60, %v5965_v5  ;;  %v6689_v49 = vld [vmem:[#allocation11_spill] sm:$0xff] }
 0x1b0   : > { %v6067_v46 = vpop.f32.mrf.mxu0  ;;  %v6128_v56 = vadd.f32 %v6035_v37, %v2252_v62  ;;  %v6137_v5 = vadd.f32 %v6690_v4, %v2254_v3  ;;  %v6695_v37 = vld [vmem:[#allocation48_spill] sm:$0xff]  ;;  %v6148_v11 = vadd.f32 %v6697_v20, %v2256_v16  ;;  %v6701_v62 = vld [vmem:[#allocation22_spill] sm:$0xff] }
 0x1b1   : > { %6686 = vst [vmem:[#allocation24_spill] sm:$0xff] %v6067_v46  ;;  %v6069_v10 = vpop.f32.mrf.mxu1  ;;  %v2245_v46 = vadd.f32 %v2102_v9, %v5935_v61  ;;  %v2512_v61 = vadd.f32 %v6019_v39, %v2244_v54  ;;  %v6105_v47 = vadd.f32 %v6023_v59, %v2246_v13  ;;  %v6122_v13 = vadd.f32 %v6031_v29, %v2250_v53  ;;  %v6691_v9 = vld [vmem:[#allocation45_spill] sm:$0xff]  ;;  %v6693_v29 = vld [vmem:[#allocation15_spill] sm:$0xff]  ;;  %v6703_v3 = vld [vmem:[#allocation30_spill] sm:$0xff] }
 0x1b2   : > { %v6071_v21 = vpop.f32.mrf.mxu0  ;;  %v6142_v27 = vadd.f32 %v6693_v29, %v2253_v44  ;;  %v6151_v51 = vadd.f32 %v6698_v7, %v2255_v36  ;;  %v6700_v53 = vld [vmem:[#allocation21_spill] sm:$0xff]  ;;  %v6163_v44 = vld [vmem:[%s6440_s2] ss:$0 sm:$0xff]  ;;  %v6711_v20 = vld [vmem:[#allocation12_spill] sm:$0xff] }
 0x1b3   : > { %6687 = vst [vmem:[#allocation39_spill] sm:$0xff] %v6071_v21  ;;  %v6074_v33 = vpop.f32.mrf.mxu1  ;;  %v2248_v21 = vadd.f32 %v4315_v22, %v5938_v52  ;;  %v2251_v52 = vadd.f32 %v2132_v45, %v5953_v35  ;;  %v6108_v26 = vadd.f32 %v6025_v63, %v2245_v46  ;;  %v6115_v35 = vadd.f32 %v6029_v32, %v2247_v12  ;;  %v6692_v22 = vld [vmem:[#allocation46_spill] sm:$0xff]  ;;  %v6704_v36 = vld [vmem:[#allocation23_spill] sm:$0xff] }
 0x1b4   : > { %v6078_v18 = vpop.f32.mrf.mxu0  ;;  %v6125_v46 = vadd.f32 %v6033_v41, %v2249_v25  ;;  %v2260_v32 = vadd.f32 %v4333_v40, %v6692_v22  ;;  %v6694_v41 = vld [vmem:[#allocation47_spill] sm:$0xff]  ;;  %v2261_v45 = vadd.f32 %v2182_v6, %v6696_v28  ;;  %v2265_v6 = vadd.f32 %v2202_v8, %v6703_v3  ;;  %v6708_v22 = vld [vmem:[#allocation33_spill] sm:$0xff] }
 0x1b5   : > { %v6083_v14 = vpop.f32.mrf.mxu1  ;;  %v6112_v54 = vadd.f32 %v6027_v48, %v2248_v21  ;;  %v6688_v21 = vld [vmem:[#allocation44_spill] sm:$0xff]  ;;  %v6134_v63 = vadd.f32 %v6689_v49, %v2251_v52  ;;  %v2257_v48 = vadd.f32 %v2162_v34, %v6691_v9  ;;  %v2259_v31 = vadd.f32 %v2172_v38, %v6694_v41  ;;  %v6699_v34 = vld [vmem:[#allocation50_spill] sm:$0xff]  ;;  %v6702_v52 = vld [vmem:[#allocation27_spill] sm:$0xff] }
 0x1b6   : > { %v6087_v50 = vpop.f32.mrf.mxu0  ;;  %v2258_v15 = vadd.f32 %v4330_v57, %v6688_v21  ;;  %v2262_v57 = vadd.f32 %v4336_v55, %v6695_v37  ;;  %v2264_v60 = vadd.f32 %v4339_v1, %v6699_v34  ;;  %v2263_v38 = vadd.f32 %v2192_v17, %v6701_v62  ;;  %v6705_v1 = vld [vmem:[#allocation26_spill] sm:$0xff]  ;;  %v6706_v17 = vld [vmem:[#allocation29_spill] sm:$0xff]  ;;  %v6709_v41 = vld [vmem:[#allocation32_spill] sm:$0xff] }
 0x1b7   : > { %v6093_v23 = vpop.f32.mrf.mxu1  ;;  %v2266_v55 = vadd.f32 %v4342_v2, %v6702_v52  ;;  %v6166_v21 = vadd.f32 %v6704_v36, %v2257_v48  ;;  %v6172_v9 = vadd.f32 %v6706_v17, %v2259_v31  ;;  %v6707_v2 = vld [vmem:[#allocation31_spill] sm:$0xff]  ;;  %v6178_v29 = vadd.f32 %v6708_v22, %v2261_v45  ;;  %v6713_v45 = vld [vmem:[#allocation14_spill] sm:$0xff]  ;;  %v6715_v62 = vld [vmem:[#allocation36_spill] sm:$0xff] }
 0x1b8   : > { %v6099_v24 = vpop.f32.mrf.mxu0  ;;  %v6155_v25 = vadd.f32 %v6700_v53, %v2258_v15  ;;  %v6175_v8 = vadd.f32 %v6707_v2, %v2262_v57  ;;  %v2268_v48 = vadd.f32 %v6069_v10, %v6709_v41  ;;  %v6710_v28 = vld [vmem:[#allocation35_spill] sm:$0xff]  ;;  %v6187_v7 = vadd.f32 %v6711_v20, %v2263_v38  ;;  %v6712_v57 = vld [vmem:[#allocation37_spill] sm:$0xff]  ;;  %v6714_v53 = vld [vmem:[#allocation34_spill] sm:$0xff] }
 0x1b9   : > { %v4351_v30 = vpop.f32.mrf.mxu1  ;;  %v6190_v34 = vadd.f32 %v6712_v57, %v2266_v55  ;;  %v2267_v10 = vadd.f32 %v6074_v33, %v6714_v53  ;;  %v2270_v52 = vadd.f32 %v6083_v14, %v6715_v62  ;;  %v6716_v55 = vld [vmem:[#allocation24_spill] sm:$0xff]  ;;  %v6720_v57 = vld [vmem:[#allocation9_spill] sm:$0xff] }
 0x1ba   : > { %v6119_v39 = vpop.f32.mrf.mxu0  ;;  %v6719_v41 = vld [vmem:[#allocation39_spill] sm:$0xff] }
 0x1bb   : > { %v6131_v59 = vpop.f32.mrf.mxu1 }
 0x1bc   : > { %v4456_v58 = vpop.f32.mrf.mxu0 }
 0x1bd   : > { %v4406_v19 = vpop.f32.mrf.mxu1 }
 0x1be   : > { %v2782_v40 = vadd.f32 %v4406_v19, %v2510_v43  ;;  %v2893_v12 = vpop.f32.mrf.mxu0  ;;  %v6169_v43 = vadd.f32 %v6705_v1, %v2260_v32  ;;  %v6183_v32 = vadd.f32 %v6710_v28, %v2264_v60  ;;  %v6718_v1 = vld [vmem:[#allocation8_spill] sm:$0xff]  ;;  %v6219_v28 = vadd.f32 %v6078_v18, %v2270_v52 }
 0x1bf   : > { %v2622_v16 = vpop.f32.mrf.mxu1  ;;  %v2272_v33 = vadd.f32 %v4351_v30, %v6718_v1 }
 0x1c0   : > { %v3053_v15 = vadd.f32 %v4456_v58, %v2782_v40  ;;  %v2781_v49 = vadd.f32 %v2622_v16, %v2509_v42  ;;  %v4459_v4 = vpop.f32.mrf.mxu0  ;;  %v6193_v40 = vadd.f32 %v6713_v45, %v2265_v6  ;;  %v6203_v16 = vadd.f32 %v6716_v55, %v2268_v48  ;;  %v6717_v6 = vld [vmem:[#allocation38_spill] sm:$0xff] }
 0x1c1   : > { %v4409_v37 = vpop.f32.mrf.mxu1  ;;  %v2269_v36 = vadd.f32 %v6093_v23, %v6717_v6  ;;  %v6215_v48 = vadd.f32 %v6719_v41, %v2267_v10  ;;  %v2271_v45 = vadd.f32 %v6131_v59, %v6720_v57 }
 0x1c2   : > { %v3092_v42 = vadd.f32 %v6163_v44, %v3053_v15  ;;  %v3052_v58 = vadd.f32 %v2893_v12, %v2781_v49  ;;  %v2784_v19 = vadd.f32 %v4409_v37, %v2512_v61  ;;  %v2903_v31 = vpop.f32.mrf.mxu0 }
 0x1c3   : > { %v2632_v60 = vpop.f32.mrf.mxu1  ;;  %v6230_v18 = vadd.f32 %v6087_v50, %v2269_v36 }
 0x1c4   : > { %v3198_v12 = vmul.f32 %v3092_v42, %v3092_v42  ;;  %3301 = vst.msk [vmem:[%s4650_s29 + $0x8] sm:$0xff] %vm469_vm3, %v3092_v42  ;;  %v3091_v61 = vadd.f32 %v6163_v44, %v3052_v58  ;;  %v3055_v38 = vadd.f32 %v4459_v4, %v2784_v19  ;;  %v4462_v3 = vpop.f32.mrf.mxu0  ;;  %v2783_v15 = vadd.f32 %v2632_v60, %v6102_v0 }
 0x1c5   : > { %v4412_v49 = vpop.f32.mrf.mxu1  ;;  %v3125_v14 = vsel %vm469_vm3, %v3092_v42, 0.0  ;;  %v6233_v60 = vadd.f32 %v6099_v24, %v2272_v33 }
 0x1c6   : > { %v3124_v17 = vsel %vm469_vm3, %v3091_v61, 0.0  ;;  %v3197_v2 = vmul.f32 %v3091_v61, %v3091_v61  ;;  %3300 = vst.msk [vmem:[%s4650_s29] sm:$0xff] %vm469_vm3, %v3091_v61  ;;  %v3094_v4 = vadd.f32 %v6163_v44, %v3055_v38  ;;  %v2913_v22 = vpop.f32.mrf.mxu0  ;;  %v3054_v37 = vadd.f32 %v2903_v31, %v2783_v15 }
 0x1c7   : > { %v3126_v23 = vadd.f32 %v3125_v14, %v3124_v17  ;;  %v2786_v30 = vadd.f32 %v4412_v49, %v6105_v47  ;;  %v2642_v0 = vpop.f32.mrf.mxu1  ;;  %v3230_v42 = vsel %vm469_vm3, %v3198_v12, 0.0 }
 0x1c8   : > { %v3229_v58 = vsel %vm469_vm3, %v3197_v2, 0.0  ;;  %3303 = vst.msk [vmem:[%s4650_s29 + $0x18] sm:$0xff] %vm469_vm3, %v3094_v4  ;;  %v2785_v19 = vadd.f32 %v2642_v0, %v6108_v26  ;;  %v4465_v20 = vpop.f32.mrf.mxu0  ;;  %v3093_v47 = vadd.f32 %v6163_v44, %v3054_v37  ;;  %v3200_v26 = vmul.f32 %v3094_v4, %v3094_v4 }
 0x1c9   : > { %v3231_v31 = vadd.f32 %v3230_v42, %v3229_v58  ;;  %v3057_v53 = vadd.f32 %v4462_v3, %v2786_v30  ;;  %v4415_v10 = vpop.f32.mrf.mxu1  ;;  %v3129_v1 = vsel %vm469_vm3, %v3094_v4, 0.0 }
 0x1ca   : > { %v3056_v62 = vadd.f32 %v2913_v22, %v2785_v19  ;;  %v2788_v52 = vadd.f32 %v4415_v10, %v6112_v54  ;;  %v2923_v12 = vpop.f32.mrf.mxu0  ;;  %v3127_v61 = vsel %vm469_vm3, %v3093_v47, 0.0  ;;  %v3199_v59 = vmul.f32 %v3093_v47, %v3093_v47  ;;  %3302 = vst.msk [vmem:[%s4650_s29 + $0x10] sm:$0xff] %vm469_vm3, %v3093_v47 }
 0x1cb   : > { %v3096_v38 = vadd.f32 %v6163_v44, %v3057_v53  ;;  %v2652_v3 = vpop.f32.mrf.mxu1  ;;  %v3128_v50 = vadd.f32 %v3127_v61, %v3126_v23  ;;  %v6243_v54 = vadd.f32 %v6119_v39, %v2271_v45  ;;  %v3234_v39 = vsel %vm469_vm3, %v3200_v26, 0.0 }
 0x1cc   : > { %v3095_v55 = vadd.f32 %v6163_v44, %v3056_v62  ;;  %v3059_v24 = vadd.f32 %v4465_v20, %v2788_v52  ;;  %v2787_v6 = vadd.f32 %v2652_v3, %v6115_v35  ;;  %v4468_v36 = vpop.f32.mrf.mxu0  ;;  %v3232_v33 = vsel %vm469_vm3, %v3199_v59, 0.0 }
 0x1cd   : > { %v3202_v15 = vmul.f32 %v3096_v38, %v3096_v38  ;;  %3305 = vst.msk [vmem:[%s4650_s29 + $0x28] sm:$0xff] %vm469_vm3, %v3096_v38  ;;  %v4418_v49 = vpop.f32.mrf.mxu1  ;;  %v3233_v14 = vadd.f32 %v3232_v33, %v3231_v31  ;;  %v3130_v17 = vadd.f32 %v3129_v1, %v3128_v50  ;;  %v3133_v20 = vsel %vm469_vm3, %v3096_v38, 0.0 }
 0x1ce   : > { %v3131_v2 = vsel %vm469_vm3, %v3095_v55, 0.0  ;;  %v3201_v22 = vmul.f32 %v3095_v55, %v3095_v55  ;;  %3304 = vst.msk [vmem:[%s4650_s29 + $0x20] sm:$0xff] %vm469_vm3, %v3095_v55  ;;  %v2933_v35 = vpop.f32.mrf.mxu0  ;;  %v3098_v41 = vadd.f32 %v6163_v44, %v3059_v24  ;;  %v3058_v4 = vadd.f32 %v2923_v12, %v2787_v6 }
 0x1cf   : > { %v2790_v23 = vadd.f32 %v4418_v49, %v6122_v13  ;;  %v2662_v37 = vpop.f32.mrf.mxu1  ;;  %v3132_v30 = vadd.f32 %v3131_v2, %v3130_v17  ;;  %v3235_v0 = vadd.f32 %v3234_v39, %v3233_v14  ;;  %v3238_v57 = vsel %vm469_vm3, %v3202_v15, 0.0 }
 0x1d0   : > { %v3236_v42 = vsel %vm469_vm3, %v3201_v22, 0.0  ;;  %v2789_v58 = vadd.f32 %v2662_v37, %v6125_v46  ;;  %v4471_v19 = vpop.f32.mrf.mxu0  ;;  %3307 = vst.msk [vmem:[%s4650_s29 + $0x38] sm:$0xff] %vm469_vm3, %v3098_v41  ;;  %v3097_v45 = vadd.f32 %v6163_v44, %v3058_v4  ;;  %v3204_v46 = vmul.f32 %v3098_v41, %v3098_v41 }
 0x1d1   : > { %v3061_v31 = vadd.f32 %v4468_v36, %v2790_v23  ;;  %v4421_v47 = vpop.f32.mrf.mxu1  ;;  %v3237_v13 = vadd.f32 %v3236_v42, %v3235_v0  ;;  %v3134_v53 = vadd.f32 %v3133_v20, %v3132_v30 }
 0x1d2   : > { %v3060_v10 = vadd.f32 %v2933_v35, %v2789_v58  ;;  %v2792_v62 = vadd.f32 %v4421_v47, %v6128_v56  ;;  %v2943_v52 = vpop.f32.mrf.mxu0  ;;  %v3135_v12 = vsel %vm469_vm3, %v3097_v45, 0.0  ;;  %v3203_v26 = vmul.f32 %v3097_v45, %v3097_v45  ;;  %3306 = vst.msk [vmem:[%s4650_s29 + $0x30] sm:$0xff] %vm469_vm3, %v3097_v45 }
 0x1d3   : > { %v3100_v61 = vadd.f32 %v6163_v44, %v3061_v31  ;;  %v2672_v59 = vpop.f32.mrf.mxu1  ;;  %v3136_v38 = vadd.f32 %v3135_v12, %v3134_v53  ;;  %v3239_v3 = vadd.f32 %v3238_v57, %v3237_v13  ;;  %v3137_v56 = vsel %vm469_vm3, %v3098_v41, 0.0 }
 0x1d4   : > { %v3099_v50 = vadd.f32 %v6163_v44, %v3060_v10  ;;  %v3063_v55 = vadd.f32 %v4471_v19, %v2792_v62  ;;  %v4474_v24 = vpop.f32.mrf.mxu0  ;;  %v3240_v6 = vsel %vm469_vm3, %v3203_v26, 0.0  ;;  %v2791_v1 = vadd.f32 %v2672_v59, %v6134_v63 }
 0x1d5   : > { %v3206_v36 = vmul.f32 %v3100_v61, %v3100_v61  ;;  %3309 = vst.msk [vmem:[%s4650_s29 + $0x48] sm:$0xff] %vm469_vm3, %v3100_v61  ;;  %v4424_v33 = vpop.f32.mrf.mxu1  ;;  %v3241_v15 = vadd.f32 %v3240_v6, %v3239_v3  ;;  %v3138_v49 = vadd.f32 %v3137_v56, %v3136_v38  ;;  %v3242_v22 = vsel %vm469_vm3, %v3204_v46, 0.0 }
 0x1d6   : > { %v3139_v14 = vsel %vm469_vm3, %v3099_v50, 0.0  ;;  %v3205_v17 = vmul.f32 %v3099_v50, %v3099_v50  ;;  %3308 = vst.msk [vmem:[%s4650_s29 + $0x40] sm:$0xff] %vm469_vm3, %v3099_v50  ;;  %v2953_v2 = vpop.f32.mrf.mxu0  ;;  %v3102_v35 = vadd.f32 %v6163_v44, %v3063_v55  ;;  %v3062_v39 = vadd.f32 %v2943_v52, %v2791_v1 }
 0x1d7   : > { %v2794_v41 = vadd.f32 %v4424_v33, %v6137_v5  ;;  %v2682_v4 = vpop.f32.mrf.mxu1  ;;  %v3140_v23 = vadd.f32 %v3139_v14, %v3138_v49  ;;  %v3243_v63 = vadd.f32 %v3242_v22, %v3241_v15  ;;  %v3141_v42 = vsel %vm469_vm3, %v3100_v61, 0.0 }
 0x1d8   : > { %v3244_v37 = vsel %vm469_vm3, %v3205_v17, 0.0  ;;  %v2793_v30 = vadd.f32 %v2682_v4, %v6142_v27  ;;  %v4477_v0 = vpop.f32.mrf.mxu0  ;;  %v3246_v58 = vsel %vm469_vm3, %v3206_v36, 0.0  ;;  %3311 = vst.msk [vmem:[%s4650_s29 + $0x58] sm:$0xff] %vm469_vm3, %v3102_v35  ;;  %v3101_v19 = vadd.f32 %v6163_v44, %v3062_v39 }
 0x1d9   : > { %v3065_v20 = vadd.f32 %v4474_v24, %v2794_v41  ;;  %v4427_v57 = vpop.f32.mrf.mxu1  ;;  %v3245_v5 = vadd.f32 %v3244_v37, %v3243_v63  ;;  %v3142_v45 = vadd.f32 %v3141_v42, %v3140_v23  ;;  %v3208_v27 = vmul.f32 %v3102_v35, %v3102_v35 }
 0x1da   : > { %v3064_v31 = vadd.f32 %v2953_v2, %v2793_v30  ;;  %v2796_v47 = vadd.f32 %v4427_v57, %v6148_v11  ;;  %v2963_v13 = vpop.f32.mrf.mxu0  ;;  %v3143_v53 = vsel %vm469_vm3, %v3101_v19, 0.0  ;;  %v3207_v10 = vmul.f32 %v3101_v19, %v3101_v19  ;;  %3310 = vst.msk [vmem:[%s4650_s29 + $0x50] sm:$0xff] %vm469_vm3, %v3101_v19 }
 0x1db   : > { %v3104_v62 = vadd.f32 %v6163_v44, %v3065_v20  ;;  %v2692_v52 = vpop.f32.mrf.mxu1  ;;  %v3144_v46 = vadd.f32 %v3143_v53, %v3142_v45  ;;  %v3247_v12 = vadd.f32 %v3246_v58, %v3245_v5  ;;  %v3145_v11 = vsel %vm469_vm3, %v3102_v35, 0.0 }
 0x1dc   : > { %v3103_v26 = vadd.f32 %v6163_v44, %v3064_v31  ;;  %v3067_v61 = vadd.f32 %v4477_v0, %v2796_v47  ;;  %v4480_v59 = vpop.f32.mrf.mxu0  ;;  %v3248_v38 = vsel %vm469_vm3, %v3207_v10, 0.0  ;;  %v2795_v50 = vadd.f32 %v2692_v52, %v6151_v51 }
 0x1dd   : > { %v3210_v3 = vmul.f32 %v3104_v62, %v3104_v62  ;;  %3313 = vst.msk [vmem:[%s4650_s29 + $0x68] sm:$0xff] %vm469_vm3, %v3104_v62  ;;  %v4430_v55 = vpop.f32.mrf.mxu1  ;;  %v3249_v24 = vadd.f32 %v3248_v38, %v3247_v12  ;;  %v3146_v56 = vadd.f32 %v3145_v11, %v3144_v46  ;;  %v3250_v33 = vsel %vm469_vm3, %v3208_v27, 0.0 }
 0x1de   : > { %v3147_v6 = vsel %vm469_vm3, %v3103_v26, 0.0  ;;  %v3209_v36 = vmul.f32 %v3103_v26, %v3103_v26  ;;  %3312 = vst.msk [vmem:[%s4650_s29 + $0x60] sm:$0xff] %vm469_vm3, %v3103_v26  ;;  %v2973_v1 = vpop.f32.mrf.mxu0  ;;  %v3106_v15 = vadd.f32 %v6163_v44, %v3067_v61  ;;  %v3066_v49 = vadd.f32 %v2963_v13, %v2795_v50 }
 0x1df   : > { %v2798_v14 = vadd.f32 %v4430_v55, %v6155_v25  ;;  %v2702_v17 = vpop.f32.mrf.mxu1  ;;  %v3148_v2 = vadd.f32 %v3147_v6, %v3146_v56  ;;  %v3251_v51 = vadd.f32 %v3250_v33, %v3249_v24  ;;  %v3149_v41 = vsel %vm469_vm3, %v3104_v62, 0.0 }
 0x1e0   : > { %v3252_v22 = vsel %vm469_vm3, %v3209_v36, 0.0  ;;  %v2797_v35 = vadd.f32 %v2702_v17, %v6166_v21  ;;  %v4483_v39 = vpop.f32.mrf.mxu0  ;;  %v3254_v4 = vsel %vm469_vm3, %v3210_v3, 0.0  ;;  %3315 = vst.msk [vmem:[%s4650_s29 + $0x78] sm:$0xff] %vm469_vm3, %v3106_v15  ;;  %v3105_v23 = vadd.f32 %v6163_v44, %v3066_v49 }
 0x1e1   : > { %v3069_v63 = vadd.f32 %v4480_v59, %v2798_v14  ;;  %v4433_v37 = vpop.f32.mrf.mxu1  ;;  %v3253_v25 = vadd.f32 %v3252_v22, %v3251_v51  ;;  %v3150_v30 = vadd.f32 %v3149_v41, %v3148_v2  ;;  %v3212_v21 = vmul.f32 %v3106_v15, %v3106_v15 }
 0x1e2   : > { %v3068_v0 = vadd.f32 %v2973_v1, %v2797_v35  ;;  %v2800_v42 = vadd.f32 %v4433_v37, %v6169_v43  ;;  %v2983_v58 = vpop.f32.mrf.mxu0  ;;  %v3151_v19 = vsel %vm469_vm3, %v3105_v23, 0.0  ;;  %v3211_v20 = vmul.f32 %v3105_v23, %v3105_v23  ;;  %3314 = vst.msk [vmem:[%s4650_s29 + $0x70] sm:$0xff] %vm469_vm3, %v3105_v23 }
 0x1e3   : > { %v3108_v57 = vadd.f32 %v6163_v44, %v3069_v63  ;;  %v2712_v5 = vpop.f32.mrf.mxu1  ;;  %v3152_v45 = vadd.f32 %v3151_v19, %v3150_v30  ;;  %v3255_v31 = vadd.f32 %v3254_v4, %v3253_v25  ;;  %v3153_v43 = vsel %vm469_vm3, %v3106_v15, 0.0 }
 0x1e4   : > { %v3107_v47 = vadd.f32 %v6163_v44, %v3068_v0  ;;  %v3071_v13 = vadd.f32 %v4483_v39, %v2800_v42  ;;  %v4486_v27 = vpop.f32.mrf.mxu0  ;;  %v3256_v53 = vsel %vm469_vm3, %v3211_v20, 0.0  ;;  %v2799_v62 = vadd.f32 %v2712_v5, %v6172_v9 }
 0x1e5   : > { %v3214_v10 = vmul.f32 %v3108_v57, %v3108_v57  ;;  %3317 = vst.msk [vmem:[%s4650_s29 + $0x88] sm:$0xff] %vm469_vm3, %v3108_v57  ;;  %v4436_v52 = vpop.f32.mrf.mxu1  ;;  %v3257_v46 = vadd.f32 %v3256_v53, %v3255_v31  ;;  %v3154_v12 = vadd.f32 %v3153_v43, %v3152_v45  ;;  %v3258_v11 = vsel %vm469_vm3, %v3212_v21, 0.0 }
 0x1e6   : > { %v3155_v26 = vsel %vm469_vm3, %v3107_v47, 0.0  ;;  %v3213_v61 = vmul.f32 %v3107_v47, %v3107_v47  ;;  %3316 = vst.msk [vmem:[%s4650_s29 + $0x80] sm:$0xff] %vm469_vm3, %v3107_v47  ;;  %v2993_v59 = vpop.f32.mrf.mxu0  ;;  %v3110_v38 = vadd.f32 %v6163_v44, %v3071_v13  ;;  %v3070_v3 = vadd.f32 %v2983_v58, %v2799_v62 }
 0x1e7   : > { %v2802_v50 = vadd.f32 %v4436_v52, %v6175_v8  ;;  %v2722_v55 = vpop.f32.mrf.mxu1  ;;  %v3156_v24 = vadd.f32 %v3155_v26, %v3154_v12  ;;  %v3259_v9 = vadd.f32 %v3258_v11, %v3257_v46  ;;  %v3157_v1 = vsel %vm469_vm3, %v3108_v57, 0.0 }
 0x1e8   : > { %v3260_v56 = vsel %vm469_vm3, %v3213_v61, 0.0  ;;  %v2801_v6 = vadd.f32 %v2722_v55, %v6178_v29  ;;  %v4489_v36 = vpop.f32.mrf.mxu0  ;;  %v3262_v33 = vsel %vm469_vm3, %v3214_v10, 0.0  ;;  %3319 = vst.msk [vmem:[%s4650_s29 + $0x98] sm:$0xff] %vm469_vm3, %v3110_v38  ;;  %v3109_v15 = vadd.f32 %v6163_v44, %v3070_v3 }
 0x1e9   : > { %v3073_v49 = vadd.f32 %v4486_v27, %v2802_v50  ;;  %v4439_v14 = vpop.f32.mrf.mxu1  ;;  %v3261_v8 = vadd.f32 %v3260_v56, %v3259_v9  ;;  %v3158_v17 = vadd.f32 %v3157_v1, %v3156_v24  ;;  %v3216_v29 = vmul.f32 %v3110_v38, %v3110_v38 }
 0x1ea   : > { %v3072_v2 = vadd.f32 %v2993_v59, %v2801_v6  ;;  %v2804_v51 = vadd.f32 %v4439_v14, %v6183_v32  ;;  %v3003_v22 = vpop.f32.mrf.mxu0  ;;  %v3159_v35 = vsel %vm469_vm3, %v3109_v15, 0.0  ;;  %v3215_v39 = vmul.f32 %v3109_v15, %v3109_v15  ;;  %3318 = vst.msk [vmem:[%s4650_s29 + $0x90] sm:$0xff] %vm469_vm3, %v3109_v15 }
 0x1eb   : > { %v3112_v41 = vadd.f32 %v6163_v44, %v3073_v49  ;;  %v2732_v4 = vpop.f32.mrf.mxu1  ;;  %v3160_v23 = vadd.f32 %v3159_v35, %v3158_v17  ;;  %v3263_v63 = vadd.f32 %v3262_v33, %v3261_v8  ;;  %v3161_v32 = vsel %vm469_vm3, %v3110_v38, 0.0 }
 0x1ec   : > { %v3111_v37 = vadd.f32 %v6163_v44, %v3072_v2  ;;  %v3075_v25 = vadd.f32 %v4489_v36, %v2804_v51  ;;  %v4492_v30 = vpop.f32.mrf.mxu0  ;;  %v3264_v0 = vsel %vm469_vm3, %v3215_v39, 0.0  ;;  %v2803_v58 = vadd.f32 %v2732_v4, %v6187_v7 }
 0x1ed   : > { %v3218_v42 = vmul.f32 %v3112_v41, %v3112_v41  ;;  %3321 = vst.msk [vmem:[%s4650_s29 + $0xa8] sm:$0xff] %vm469_vm3, %v3112_v41  ;;  %v4442_v21 = vpop.f32.mrf.mxu1  ;;  %v3265_v19 = vadd.f32 %v3264_v0, %v3263_v63  ;;  %v3162_v20 = vadd.f32 %v3161_v32, %v3160_v23  ;;  %v3266_v31 = vsel %vm469_vm3, %v3216_v29, 0.0 }
 0x1ee   : > { %v3163_v57 = vsel %vm469_vm3, %v3111_v37, 0.0  ;;  %v3217_v5 = vmul.f32 %v3111_v37, %v3111_v37  ;;  %3320 = vst.msk [vmem:[%s4650_s29 + $0xa0] sm:$0xff] %vm469_vm3, %v3111_v37  ;;  %v3013_v45 = vpop.f32.mrf.mxu0  ;;  %v3114_v47 = vadd.f32 %v6163_v44, %v3075_v25  ;;  %v3074_v13 = vadd.f32 %v3003_v22, %v2803_v58 }
 0x1ef   : > { %v2806_v27 = vadd.f32 %v4442_v21, %v6190_v34  ;;  %v2742_v43 = vpop.f32.mrf.mxu1  ;;  %v3164_v53 = vadd.f32 %v3163_v57, %v3162_v20  ;;  %v3267_v7 = vadd.f32 %v3266_v31, %v3265_v19  ;;  %v3165_v46 = vsel %vm469_vm3, %v3112_v41, 0.0 }
 0x1f0   : > { %v3268_v10 = vsel %vm469_vm3, %v3217_v5, 0.0  ;;  %v2805_v62 = vadd.f32 %v2742_v43, %v6193_v40  ;;  %v4495_v52 = vpop.f32.mrf.mxu0  ;;  %v3270_v12 = vsel %vm469_vm3, %v3218_v42, 0.0  ;;  %3323 = vst.msk [vmem:[%s4650_s29 + $0xb8] sm:$0xff] %vm469_vm3, %v3114_v47  ;;  %v3113_v26 = vadd.f32 %v6163_v44, %v3074_v13 }
 0x1f1   : > { %v3077_v61 = vadd.f32 %v4492_v30, %v2806_v27  ;;  %v4445_v59 = vpop.f32.mrf.mxu1  ;;  %v3269_v34 = vadd.f32 %v3268_v10, %v3267_v7  ;;  %v3166_v11 = vadd.f32 %v3165_v46, %v3164_v53  ;;  %v3220_v40 = vmul.f32 %v3114_v47, %v3114_v47 }
 0x1f2   : > { %v3076_v38 = vadd.f32 %v3013_v45, %v2805_v62  ;;  %v2808_v3 = vadd.f32 %v4445_v59, %v6203_v16  ;;  %v3023_v50 = vpop.f32.mrf.mxu0  ;;  %v3167_v55 = vsel %vm469_vm3, %v3113_v26, 0.0  ;;  %v3219_v24 = vmul.f32 %v3113_v26, %v3113_v26  ;;  %3322 = vst.msk [vmem:[%s4650_s29 + $0xb0] sm:$0xff] %vm469_vm3, %v3113_v26 }
 0x1f3   : > { %v3116_v9 = vadd.f32 %v6163_v44, %v3077_v61  ;;  %v2752_v56 = vpop.f32.mrf.mxu1  ;;  %v3168_v6 = vadd.f32 %v3167_v55, %v3166_v11  ;;  %v3271_v36 = vadd.f32 %v3270_v12, %v3269_v34  ;;  %v3169_v16 = vsel %vm469_vm3, %v3114_v47, 0.0 }
 0x1f4   : > { %v3115_v1 = vadd.f32 %v6163_v44, %v3076_v38  ;;  %v3079_v33 = vadd.f32 %v4495_v52, %v2808_v3  ;;  %v4498_v15 = vpop.f32.mrf.mxu0  ;;  %v3272_v49 = vsel %vm469_vm3, %v3219_v24, 0.0  ;;  %v2807_v8 = vadd.f32 %v2752_v56, %v6215_v48 }
 0x1f5   : > { %v3222_v14 = vmul.f32 %v3116_v9, %v3116_v9  ;;  %3325 = vst.msk [vmem:[%s4650_s29 + $0xc8] sm:$0xff] %vm469_vm3, %v3116_v9  ;;  %v4448_v17 = vpop.f32.mrf.mxu1  ;;  %v3273_v2 = vadd.f32 %v3272_v49, %v3271_v36  ;;  %v3170_v51 = vadd.f32 %v3169_v16, %v3168_v6  ;;  %v3274_v39 = vsel %vm469_vm3, %v3220_v40, 0.0 }
 0x1f6   : > { %v3171_v22 = vsel %vm469_vm3, %v3115_v1, 0.0  ;;  %v3221_v29 = vmul.f32 %v3115_v1, %v3115_v1  ;;  %3324 = vst.msk [vmem:[%s4650_s29 + $0xc0] sm:$0xff] %vm469_vm3, %v3115_v1  ;;  %v3033_v35 = vpop.f32.mrf.mxu0  ;;  %v3118_v41 = vadd.f32 %v6163_v44, %v3079_v33  ;;  %v3078_v4 = vadd.f32 %v3023_v50, %v2807_v8 }
 0x1f7   : > { %v2810_v23 = vadd.f32 %v4448_v17, %v6219_v28  ;;  %v2762_v63 = vpop.f32.mrf.mxu1  ;;  %v3172_v37 = vadd.f32 %v3171_v22, %v3170_v51  ;;  %v3275_v48 = vadd.f32 %v3274_v39, %v3273_v2  ;;  %v3173_v32 = vsel %vm469_vm3, %v3116_v9, 0.0 }
 0x1f8   : > { %v3276_v25 = vsel %vm469_vm3, %v3221_v29, 0.0  ;;  %v2809_v30 = vadd.f32 %v2762_v63, %v6230_v18  ;;  %v3278_v0 = vsel %vm469_vm3, %v3222_v14, 0.0  ;;  %3327 = vst.msk [vmem:[%s4650_s29 + $0xd8] sm:$0xff] %vm469_vm3, %v3118_v41  ;;  %v3117_v42 = vadd.f32 %v6163_v44, %v3078_v4  ;;  %v4501_v5 = vpop.f32.mrf.mxu0  ;;  %v3123_v63 = vld [vmem:[#allocation2] sm:$0x1] }
 0x1f9   : > { %v3081_v58 = vadd.f32 %v4498_v15, %v2810_v23  ;;  %v4451_v21 = vpop.f32.mrf.mxu1  ;;  %v3277_v19 = vadd.f32 %v3276_v25, %v3275_v48  ;;  %v3174_v28 = vadd.f32 %v3173_v32, %v3172_v37  ;;  %v3224_v45 = vmul.f32 %v3118_v41, %v3118_v41  ;;  %v3196_v25 = vld [vmem:[#allocation4] sm:$0x1] }
 0x1fa   : > { %v3080_v20 = vadd.f32 %v3033_v35, %v2809_v30  ;;  %v2812_v57 = vadd.f32 %v4451_v21, %v6233_v60  ;;  %v3175_v18 = vsel %vm469_vm3, %v3117_v42, 0.0  ;;  %v3223_v31 = vmul.f32 %v3117_v42, %v3117_v42  ;;  %3326 = vst.msk [vmem:[%s4650_s29 + $0xd0] sm:$0xff] %vm469_vm3, %v3117_v42  ;;  %v3043_v61 = vpop.f32.mrf.mxu0 }
 0x1fb   : > { %v3120_v47 = vadd.f32 %v6163_v44, %v3081_v58  ;;  %v2772_v13 = vpop.f32.mrf.mxu1  ;;  %v3176_v27 = vadd.f32 %v3175_v18, %v3174_v28  ;;  %v3279_v43 = vadd.f32 %v3278_v0, %v3277_v19  ;;  %v3177_v10 = vsel %vm469_vm3, %v3118_v41, 0.0 }
 0x1fc   : > { %v3119_v53 = vadd.f32 %v6163_v44, %v3080_v20  ;;  %v3083_v7 = vadd.f32 %v4501_v5, %v2812_v57  ;;  %v3280_v60 = vsel %vm469_vm3, %v3223_v31, 0.0  ;;  %v2811_v62 = vadd.f32 %v2772_v13, %v6243_v54 }
 0x1fd   : > { %3329 = vst.msk [vmem:[%s4650_s29 + $0xe8] sm:$0xff] %vm469_vm3, %v3120_v47  ;;  %v3281_v52 = vadd.f32 %v3280_v60, %v3279_v43  ;;  %v3178_v46 = vadd.f32 %v3177_v10, %v3176_v27  ;;  %v3282_v59 = vsel %vm469_vm3, %v3224_v45, 0.0  ;;  %v3226_v34 = vmul.f32 %v3120_v47, %v3120_v47 }
 0x1fe   : > { %v3179_v12 = vsel %vm469_vm3, %v3119_v53, 0.0  ;;  %v3225_v26 = vmul.f32 %v3119_v53, %v3119_v53  ;;  %3328 = vst.msk [vmem:[%s4650_s29 + $0xe0] sm:$0xff] %vm469_vm3, %v3119_v53  ;;  %v3122_v11 = vadd.f32 %v6163_v44, %v3083_v7  ;;  %v3082_v38 = vadd.f32 %v3043_v61, %v2811_v62 }
 0x1ff   : > { %v3180_v3 = vadd.f32 %v3179_v12, %v3178_v46  ;;  %v3283_v50 = vadd.f32 %v3282_v59, %v3281_v52  ;;  %v3181_v54 = vsel %vm469_vm3, %v3120_v47, 0.0  ;;  %v3286_v56 = vsel %vm469_vm3, %v3226_v34, 0.0 }
 0x200   : > { %v3284_v40 = vsel %vm469_vm3, %v3225_v26, 0.0  ;;  %3331 = vst.msk [vmem:[%s4650_s29 + $0xf8] sm:$0xff] %vm469_vm3, %v3122_v11  ;;  %v3121_v55 = vadd.f32 %v6163_v44, %v3082_v38  ;;  %v3228_v6 = vmul.f32 %v3122_v11, %v3122_v11  ;;  %v3185_v16 = vsel %vm469_vm3, %v3122_v11, 0.0 }
 0x201   : > { %v3285_v24 = vadd.f32 %v3284_v40, %v3283_v50  ;;  %v3182_v9 = vadd.f32 %v3181_v54, %v3180_v3 }
 0x202   : > { %v3183_v36 = vsel %vm469_vm3, %v3121_v55, 0.0  ;;  %v3227_v1 = vmul.f32 %v3121_v55, %v3121_v55  ;;  %3330 = vst.msk [vmem:[%s4650_s29 + $0xf0] sm:$0xff] %vm469_vm3, %v3121_v55  ;;  %v3290_v44 = vsel %vm469_vm3, %v3228_v6, 0.0  ;;  %s4593_s29 = smov [#allocation2]  }
 0x203   : > { %v3184_v33 = vadd.f32 %v3183_v36, %v3182_v9  ;;  %v3287_v15 = vadd.f32 %v3286_v56, %v3285_v24  ;;  %s3347_s8 = sshll.u32 %s4593_s29, 4  ;;  %s3348_s8 = int_to_ptr.vmem [resolvable:$true] %s3347_s8 }
 0x204   : > { %v3288_v49 = vsel %vm469_vm3, %v3227_v1, 0.0  ;;  %s4528_s11 = scalar_lea.vmem %s3348_s8, 16  ;;  %s4534_s12 = scalar_lea.vmem %s3348_s8, 32 }
 0x205   : > { %v3186_v14 = vadd.f32 %v3185_v16, %v3184_v33  ;;  %v3289_v8 = vadd.f32 %v3288_v49, %v3287_v15  ;;  %p4529_p6 = scmp.ne.s32.totalorder %s3348_s8, %s4528_s11  ;;  %p4535_p9 = scmp.lt.s32.totalorder %s3348_s8, %s3348_s8 }
 0x206   : > { %p4536_p10 = scmp.lt.s32.totalorder %s4534_s12, %s4528_s11 }
 0x207   : > { %v3187_v17 = vrot.slane %v3186_v14, 4  ;;  %v3291_v2 = vadd.f32 %v3290_v44, %v3289_v8  ;;  %p4530_p7 = pnand %p4529_p6, %p4513_p5 }
 0x208   : > { %p4537_p11 = por %p4536_p10, %p4535_p9 }
 0x209   : > { %v3188_v51 = vadd.f32 %v3187_v17, %v3186_v14  ;;  %v3292_v22 = vrot.slane %v3291_v2, 4  ;;  %p4531_p8 = pneg %p4530_p7 }
 0x20b   : > { %v3189_v29 = vrot.slane %v3188_v51, 2  ;;  %v3293_v35 = vadd.f32 %v3292_v22, %v3291_v2  ;;  %p4538_p12 = pnand %p4537_p11, %p4531_p8 }
 0x20d   : > { %v3190_v39 = vadd.f32 %v3189_v29, %v3188_v51  ;;  %v3294_v41 = vrot.slane %v3293_v35, 2 }
 0x20f   : > { %v3191_v4 = vrot.slane %v3190_v39, 1  ;;  %v3295_v23 = vadd.f32 %v3294_v41, %v3293_v35 }
 0x211   : > { %v3192_v37 = vadd.f32 %v3191_v4, %v3190_v39  ;;  %v3296_v48 = vrot.slane %v3295_v23, 1 }
 0x213   : > { %v3193_v30 = vadd.f32 %v3192_v37, %v3123_v63  ;;  %v3297_v32 = vadd.f32 %v3296_v48, %v3295_v23 }
 0x215   : > { %3195 = vst.msk [vmem:[#allocation2] sm:$0x1] %vm3194_vm5, %v3193_v30  ;;  %v3298_v0 = vadd.f32 %v3297_v32, %v3196_v25 }
 0x216   : > { %4541 = shalt.err (!%p4538_p12)
}
 0x217   : > { %4506 = dma.vmem_to_hbm [thread:$0]  (%p4513_p5), %s3348_s8, 16, %s6444_s6, [#allocation3]   ;;  %3299 = vst.msk [vmem:[#allocation4] sm:$0x1] %vm3194_vm5, %v3298_v0 }
 0x218   : > { %s4552_s15 = scalar_lea.vmem %s3359_s10, 16  ;;  %s4558_s16 = scalar_lea.vmem %s3359_s10, 32 }
 0x219   : > { %p4553_p13 = scmp.ne.s32.totalorder %s3359_s10, %s4552_s15  ;;  %p4559_p2 = scmp.lt.s32.totalorder %s3359_s10, %s3359_s10 }
 0x21a   : > { %p4560_p3 = scmp.lt.s32.totalorder %s4558_s16, %s4552_s15 }
 0x21b   : > { %p4554_p0 = pnand %p4553_p13, %p4513_p5 }
 0x21c   : > { %p4561_p4 = por %p4560_p3, %p4559_p2 }
 0x21d   : > { %p4555_p1 = pneg %p4554_p0 }
 0x21f   : > { %p4562_p6 = pnand %p4561_p4, %p4555_p1 }
 0x221   : > { %4565 = shalt.err (!%p4562_p6)
}
 0x222   : > { %4508 = dma.vmem_to_hbm [thread:$0]  (%p4513_p5), %s3359_s10, 16, %s6445_s7, [#allocation5]  }
 0x223   : > { %4581 = dma.done.wait (%p4513_p5), [#allocation3], 16  }
 0x224   : > { %4583 = vsyncadd (%p4513_p5), [#allocation3], 4294967280 }
 0x225   : > { %4585 = dma.done.wait (%p4513_p5), [#allocation5], 16  }
 0x226   : > { %4587 = vsyncadd (%p4513_p5), [#allocation5], 4294967280 }
 0x227 PF: > { %s20_s24 = sadd.s32 1, %s4590_s24  }
 0x228   : > { %p17_p7 = scmp.ge.s32.totalorder %s20_s24, 4  }
 0x22a   :  { %19 = sbr.rel (!%p17_p7) target bundleno = 2 (0x2), region = 99 }
 0x22f   :  { %3383 = vsyncpa [#allocation3], 1 }
 0x230   :  { %3385 = vsyncpa [#allocation3 + $0x1], 1 }
 0x231   :  { %3386 = vsyncpa [#allocation5], 1 }

</bundles_post_ra>
